<compile_context>
chip_gen: v7x
topology: tpu7x:2x2x1
jax: 0.10.0
libtpu: 0.0.40
codegen_flags: <defaults>
</compile_context>

<pallas_src>
import jax
import jax.numpy as jnp
from jax.experimental import pallas as pl
from jax.experimental.pallas import tpu as pltpu


def _sigmoid(x):
    # sigmoid(x) = 0.5 * (1 + tanh(x / 2)) -> one EUP op per gate.
    return 0.5 * jnp.tanh(0.5 * x) + 0.5


def _fused_bilstm_kernel(gf_ref, gr_ref, whh_ref, of_ref, or_ref,
                         hf_ref, cf_ref, hr_ref, cr_ref):
    """One grid step = one time-chunk of TT steps, BOTH directions fused.

    Forward walks rows 0..TT-1 of its chunk (chunk i); reverse walks rows TT-1..0 of
    its chunk (chunk n-1-i, selected by the BlockSpec index map). h/c for both
    directions live in VMEM scratch and persist across the sequential chunk axis.
    """
    i = pl.program_id(0)
    TT = gf_ref.shape[0]
    H = hf_ref.shape[-1]

    @pl.when(i == 0)
    def _init():
        hf_ref[...] = jnp.zeros_like(hf_ref)
        cf_ref[...] = jnp.zeros_like(cf_ref)
        hr_ref[...] = jnp.zeros_like(hr_ref)
        cr_ref[...] = jnp.zeros_like(cr_ref)

    # Both directions' recurrent weights (resident in VMEM for the whole call).
    whh_f = whh_ref[0]
    whh_r = whh_ref[1]

    def gate_math(gates, c):
        # PyTorch gate order [i, f, g, o]; gate math kept in f32 (VPU/EUP).
        # NOTE: for H not a multiple of 128 these slices are not lane-aligned;
        # padding H in the wrapper would make them free views (only worth it when
        # H is close to a multiple of 128).
        ig = _sigmoid(gates[:, 0:H])
        fg = _sigmoid(gates[:, H:2 * H])
        gg = jnp.tanh(gates[:, 2 * H:3 * H])
        og = _sigmoid(gates[:, 3 * H:4 * H])
        c_new = fg * c + ig * gg
        h_new = og * jnp.tanh(c_new)
        return h_new, c_new

    def step(s, carry):
        hf, cf, hr, cr = carry
        rr = TT - 1 - s
        # Two independent recurrence chains -> MXU/EUP ILP within each step.
        gf = gf_ref[s] + jnp.dot(hf.astype(whh_f.dtype), whh_f,
                                 preferred_element_type=jnp.float32)
        gr = gr_ref[rr] + jnp.dot(hr.astype(whh_r.dtype), whh_r,
                                  preferred_element_type=jnp.float32)
        hf, cf = gate_math(gf, cf)
        hr, cr = gate_math(gr, cr)
        of_ref[s] = hf.astype(of_ref.dtype)
        or_ref[rr] = hr.astype(or_ref.dtype)
        return hf, cf, hr, cr

    carry0 = (hf_ref[...], cf_ref[...], hr_ref[...], cr_ref[...])
    unroll = TT if TT <= 16 else 8          # partial unroll for long chunks
    hf, cf, hr, cr = jax.lax.fori_loop(0, TT, step, carry0, unroll=unroll)
    hf_ref[...] = hf
    cf_ref[...] = cf
    hr_ref[...] = hr
    cr_ref[...] = cr


def bidirectional_lstm(x, params, dropout_p=0.0, *, time_block=64,
                       compute_dtype=jnp.bfloat16,
                       vmem_budget_bytes=40 * 1024 * 1024):
    """x: (B, T, D) batch_first (matches PyTorch). Returns (B, T, 2H) float32.

    compute_dtype is used for the matmul operands (g_in, W_ih, W_hh); accumulation,
    gate math, recurrent state and outputs stay float32.
    """
    B, T, D = x.shape
    H = params["weight_hh_l0"].shape[1]
    G = 4 * H
    cdt = jnp.dtype(compute_dtype)
    g_item = cdt.itemsize

    B_pad = ((B + 7) // 8) * 8              # sublane-align the batch rows

    # ---- choose TT under a VMEM budget (double-buffered in/out blocks, resident
    # W_hh, recurrent state) so pipelining survives v7x's 64 MiB/TC as well ----
    def footprint(tt):
        g_buf = 2 * 2 * tt * B_pad * G * g_item      # 2 dirs x double-buffered gates
        o_buf = 2 * 2 * tt * B_pad * H * 4           # 2 dirs x double-buffered f32 out
        w_buf = 2 * 2 * H * G * g_item               # stacked W_hh (allow 2 buffers)
        state = 4 * B_pad * H * 4                    # h/c for both directions
        return g_buf + o_buf + w_buf + state

    TT = max(1, min(time_block, T))
    while TT > 1 and footprint(TT) > vmem_budget_bytes:
        TT //= 2
    n_chunks = pl.cdiv(T, TT)
    T_pad = n_chunks * TT

    vmem_limit = int(min(max(footprint(TT) * 1.5 + (4 << 20), 16 << 20), 64 << 20))

    x_tm = jnp.transpose(x, (1, 0, 2))                                   # (T, B, D)

    # Per-direction weights, pre-transposed so the kernel computes h @ W_hh.
    w_hh = jnp.stack([params["weight_hh_l0"].T,
                      params["weight_hh_l0_reverse"].T]).astype(cdt)     # (2, H, 4H)
    w_ih_f = params["weight_ih_l0"].T.astype(cdt)                        # (D, 4H)
    w_ih_r = params["weight_ih_l0_reverse"].T.astype(cdt)
    b_f = (params["bias_ih_l0"] + params["bias_hh_l0"]).astype(jnp.float32)
    b_r = (params["bias_ih_l0_reverse"]
           + params["bias_hh_l0_reverse"]).astype(jnp.float32)

    # ---- Hoisted input projection: one large MXU matmul per direction ----
    # bf16 operands + f32 accumulation at DEFAULT precision (no 6-pass HIGHEST);
    # HIGH (3-pass) only when explicitly running the float32 path.
    proj_prec = (jax.lax.Precision.HIGH if cdt == jnp.dtype(jnp.float32)
                 else jax.lax.Precision.DEFAULT)

    def project(w, b):
        g = jnp.einsum("tbd,dg->tbg", x_tm.astype(cdt), w,
                       preferred_element_type=jnp.float32, precision=proj_prec)
        g = g + b
        # Pad time to a multiple of TT and batch to a multiple of 8 (zero gate
        # input keeps a zero (h, c) state at zero -> padding is exact).
        g = jnp.pad(g, ((0, T_pad - T), (0, B_pad - B), (0, 0)))
        return g.astype(cdt)

    g_fwd = project(w_ih_f, b_f)            # (T_pad, B_pad, 4H)
    g_rev = project(w_ih_r, b_r)

    grid_spec = pltpu.PrefetchScalarGridSpec(
        num_scalar_prefetch=0,
        grid=(n_chunks,),
        in_specs=[
            # forward gates: chunk i
            pl.BlockSpec((TT, B_pad, G), lambda i: (i, 0, 0)),
            # reverse gates: chunk n-1-i (reverse walks the sequence from the end)
            pl.BlockSpec((TT, B_pad, G), lambda i: (n_chunks - 1 - i, 0, 0)),
            # both directions' W_hh: constant block index -> fetched once, resident
            pl.BlockSpec((2, H, G), lambda i: (0, 0, 0)),
        ],
        out_specs=[
            pl.BlockSpec((TT, B_pad, H), lambda i: (i, 0, 0)),
            pl.BlockSpec((TT, B_pad, H), lambda i: (n_chunks - 1 - i, 0, 0)),
        ],
        scratch_shapes=[pltpu.VMEM((B_pad, H), jnp.float32)] * 4,   # h_f, c_f, h_r, c_r
    )

    out_struct = jax.ShapeDtypeStruct((T_pad, B_pad, H), jnp.float32)
    out_f, out_r = pl.pallas_call(
        _fused_bilstm_kernel,
        out_shape=(out_struct, out_struct),
        grid_spec=grid_spec,
        compiler_params=pltpu.CompilerParams(
            dimension_semantics=("arbitrary",),      # the chunk axis carries the recurrence
            vmem_limit_bytes=vmem_limit),
    )(g_fwd, g_rev, w_hh)

    y = jnp.concatenate([out_f[:T, :B], out_r[:T, :B]], axis=-1)     # (T, B, 2H)
    y = jnp.transpose(y, (1, 0, 2))                                  # (B, T, 2H)
    # TODO(synk): nn.Dropout is stochastic; applied here as inference-mode identity.
    return y


# ---------------- pure-JAX reference for the correctness check ----------------
def _lstm_dir_ref(x_tbd, wih, whh, b_ih, b_hh):
    H = whh.shape[1]
    B = x_tbd.shape[1]
    HIGH = jax.lax.Precision.HIGHEST

    def step_fn(carry, xt):
        h, c = carry
        gates = (jnp.dot(xt, wih.T, precision=HIGH)
                 + jnp.dot(h, whh.T, precision=HIGH) + b_ih + b_hh)
        i = jax.nn.sigmoid(gates[:, 0:H])
        f = jax.nn.sigmoid(gates[:, H:2 * H])
        g = jnp.tanh(gates[:, 2 * H:3 * H])
        o = jax.nn.sigmoid(gates[:, 3 * H:4 * H])
        c = f * c + i * g
        h = o * jnp.tanh(c)
        return (h, c), h

    init = (jnp.zeros((B, H), jnp.float32), jnp.zeros((B, H), jnp.float32))
    _, ys = jax.lax.scan(step_fn, init, x_tbd)
    return ys  # (T, B, H)


def bidirectional_lstm_ref(x, params):
    x_tm = jnp.transpose(x, (1, 0, 2)).astype(jnp.float32)
    yf = _lstm_dir_ref(x_tm, params["weight_ih_l0"], params["weight_hh_l0"],
                       params["bias_ih_l0"], params["bias_hh_l0"])
    yr = _lstm_dir_ref(x_tm[::-1], params["weight_ih_l0_reverse"],
                       params["weight_hh_l0_reverse"],
                       params["bias_ih_l0_reverse"], params["bias_hh_l0_reverse"])[::-1]
    return jnp.transpose(jnp.concatenate([yf, yr], axis=-1), (1, 0, 2))


if __name__ == "__main__":
    B, T, D, H = 2, 8, 16, 32       # batch, seq, rnn_dim, hidden_size
    key = jax.random.PRNGKey(0)
    ks = jax.random.split(key, 9)
    k_init = 1.0 / jnp.sqrt(H)      # PyTorch nn.LSTM uniform init bound

    def u(k, shape):
        return jax.random.uniform(k, shape, jnp.float32, -k_init, k_init)

    params = {
        "weight_ih_l0":         u(ks[0], (4 * H, D)),
        "weight_hh_l0":         u(ks[1], (4 * H, H)),
        "bias_ih_l0":           u(ks[2], (4 * H,)),
        "bias_hh_l0":           u(ks[3], (4 * H,)),
        "weight_ih_l0_reverse": u(ks[4], (4 * H, D)),
        "weight_hh_l0_reverse": u(ks[5], (4 * H, H)),
        "bias_ih_l0_reverse":   u(ks[6], (4 * H,)),
        "bias_hh_l0_reverse":   u(ks[7], (4 * H,)),
    }

    x = jax.random.normal(ks[8], (B, T, D), jnp.float32)

    ref = bidirectional_lstm_ref(x, params)

    # Default (bf16 matmul operands, f32 accumulation / gate math).
    out_bf16 = jax.block_until_ready(bidirectional_lstm(x, params, dropout_p=0.1))
    assert out_bf16.shape == (B, T, 2 * H), out_bf16.shape
    assert jnp.allclose(out_bf16, ref, rtol=3e-2, atol=3e-2), \
        f"bf16 path max abs err {jnp.max(jnp.abs(out_bf16 - ref))}"

    # Full float32 path (tight numerics vs. the PyTorch-style reference).
    out_f32 = jax.block_until_ready(
        bidirectional_lstm(x, params, dropout_p=0.1, compute_dtype=jnp.float32))
    assert jnp.allclose(out_f32, ref, rtol=1e-4, atol=1e-4), \
        f"f32 path max abs err {jnp.max(jnp.abs(out_f32 - ref))}"

    print("KERNEL_OK")
</pallas_src>

<mosaic_0001>
module attributes {stable_mosaic.version = 11 : i64} {
  func.func @_fused_bilstm_kernel(%arg0: i32, %arg1: memref<8x8x128xbf16, #tpu.memory_space<vmem>>, %arg2: memref<8x8x128xbf16, #tpu.memory_space<vmem>>, %arg3: memref<2x32x128xbf16, #tpu.memory_space<vmem>>, %arg4: memref<8x8x32xf32, #tpu.memory_space<vmem>>, %arg5: memref<8x8x32xf32, #tpu.memory_space<vmem>>, %arg6: memref<8x32xf32, #tpu.memory_space<vmem>>, %arg7: memref<8x32xf32, #tpu.memory_space<vmem>>, %arg8: memref<8x32xf32, #tpu.memory_space<vmem>>, %arg9: memref<8x32xf32, #tpu.memory_space<vmem>>) attributes {dimension_semantics = [#tpu.dimension_semantics<arbitrary>], iteration_bounds = array<i64: 1>, scalar_prefetch = 0 : i64, scratch_operands = 4 : i64, tpu.core_type = #tpu.core_type<tc>, window_params = [{transform_indices = @transform_0, window_bounds = array<i64: 8, 8, 128>}, {transform_indices = @transform_1, window_bounds = array<i64: 8, 8, 128>}, {pipeline_mode = #tpu.pipeline_mode<synchronous>, transform_indices = @transform_2, window_bounds = array<i64: 2, 32, 128>}, {transform_indices = @transform_3, window_bounds = array<i64: 8, 8, 32>}, {transform_indices = @transform_4, window_bounds = array<i64: 8, 8, 32>}]} {
    %c0_i32 = arith.constant 0 : i32
    %0 = arith.cmpi eq, %arg0, %c0_i32 : i32
    %1 = arith.extui %0 : i1 to i32
    %c0_i32_0 = arith.constant 0 : i32
    %2 = arith.cmpi ne, %1, %c0_i32_0 : i32
    scf.if %2 {
      %cst_253 = arith.constant 0.000000e+00 : f32
      %695 = vector.broadcast %cst_253 : f32 to vector<8x32xf32>
      %c0_254 = arith.constant 0 : index
      %c0_255 = arith.constant 0 : index
      %696 = vector.load %arg6[%c0_254, %c0_255] : memref<8x32xf32, #tpu.memory_space<vmem>>, vector<8x32xf32>
      tpu.vector_store %arg6[%c0_254, %c0_255], %695 {strides = array<i32>} : memref<8x32xf32, #tpu.memory_space<vmem>>, vector<8x32xf32>,
      %cst_256 = arith.constant 0.000000e+00 : f32
      %697 = vector.broadcast %cst_256 : f32 to vector<8x32xf32>
      %c0_257 = arith.constant 0 : index
      %c0_258 = arith.constant 0 : index
      %698 = vector.load %arg7[%c0_257, %c0_258] : memref<8x32xf32, #tpu.memory_space<vmem>>, vector<8x32xf32>
      tpu.vector_store %arg7[%c0_257, %c0_258], %697 {strides = array<i32>} : memref<8x32xf32, #tpu.memory_space<vmem>>, vector<8x32xf32>,
      %cst_259 = arith.constant 0.000000e+00 : f32
      %699 = vector.broadcast %cst_259 : f32 to vector<8x32xf32>
      %c0_260 = arith.constant 0 : index
      %c0_261 = arith.constant 0 : index
      %700 = vector.load %arg8[%c0_260, %c0_261] : memref<8x32xf32, #tpu.memory_space<vmem>>, vector<8x32xf32>
      tpu.vector_store %arg8[%c0_260, %c0_261], %699 {strides = array<i32>} : memref<8x32xf32, #tpu.memory_space<vmem>>, vector<8x32xf32>,
      %cst_262 = arith.constant 0.000000e+00 : f32
      %701 = vector.broadcast %cst_262 : f32 to vector<8x32xf32>
      %c0_263 = arith.constant 0 : index
      %c0_264 = arith.constant 0 : index
      %702 = vector.load %arg9[%c0_263, %c0_264] : memref<8x32xf32, #tpu.memory_space<vmem>>, vector<8x32xf32>
      tpu.vector_store %arg9[%c0_263, %c0_264], %701 {strides = array<i32>} : memref<8x32xf32, #tpu.memory_space<vmem>>, vector<8x32xf32>,
    } else {
    }
    %c0 = arith.constant 0 : index
    %c0_1 = arith.constant 0 : index
    %c0_2 = arith.constant 0 : index
    %3 = vector.load %arg3[%c0, %c0_1, %c0_2] : memref<2x32x128xbf16, #tpu.memory_space<vmem>>, vector<1x32x128xbf16>
    %4 = vector.shape_cast %3 : vector<1x32x128xbf16> to vector<32x128xbf16>
    %c1 = arith.constant 1 : index
    %c0_3 = arith.constant 0 : index
    %c0_4 = arith.constant 0 : index
    %5 = vector.load %arg3[%c1, %c0_3, %c0_4] : memref<2x32x128xbf16, #tpu.memory_space<vmem>>, vector<1x32x128xbf16>
    %6 = vector.shape_cast %5 : vector<1x32x128xbf16> to vector<32x128xbf16>
    %c0_5 = arith.constant 0 : index
    %c0_6 = arith.constant 0 : index
    %7 = vector.load %arg6[%c0_5, %c0_6] : memref<8x32xf32, #tpu.memory_space<vmem>>, vector<8x32xf32>
    %c0_7 = arith.constant 0 : index
    %c0_8 = arith.constant 0 : index
    %8 = vector.load %arg7[%c0_7, %c0_8] : memref<8x32xf32, #tpu.memory_space<vmem>>, vector<8x32xf32>
    %c0_9 = arith.constant 0 : index
    %c0_10 = arith.constant 0 : index
    %9 = vector.load %arg8[%c0_9, %c0_10] : memref<8x32xf32, #tpu.memory_space<vmem>>, vector<8x32xf32>
    %c0_11 = arith.constant 0 : index
    %c0_12 = arith.constant 0 : index
    %10 = vector.load %arg9[%c0_11, %c0_12] : memref<8x32xf32, #tpu.memory_space<vmem>>, vector<8x32xf32>
    %c0_i32_13 = arith.constant 0 : i32
    %c7_i32 = arith.constant 7 : i32
    %11 = arith.subi %c7_i32, %c0_i32_13 : i32
    %12 = arith.index_cast %c0_i32_13 : i32 to index
    %c0_14 = arith.constant 0 : index
    %c0_15 = arith.constant 0 : index
    %13 = vector.load %arg1[%12, %c0_14, %c0_15] : memref<8x8x128xbf16, #tpu.memory_space<vmem>>, vector<1x8x128xbf16>
    %14 = vector.shape_cast %13 : vector<1x8x128xbf16> to vector<8x128xbf16>
    %15 = arith.truncf %7 : vector<8x32xf32> to vector<8x32xbf16>
    %cst = arith.constant dense<0.000000e+00> : vector<8x128xf32>
    %16 = tpu.matmul %15, %4, %cst {dimension_numbers = #tpu.dot_dimension_numbers<[1], [0], [0], [1], [0, 0, 1, 1], [], []>} : vector<8x32xbf16>, vector<32x128xbf16>, vector<8x128xf32> -> vector<8x128xf32>
    %17 = arith.extf %14 : vector<8x128xbf16> to vector<8x128xf32>
    %18 = arith.addf %17, %16 : vector<8x128xf32>
    %19 = arith.index_cast %11 : i32 to index
    %c0_16 = arith.constant 0 : index
    %c0_17 = arith.constant 0 : index
    %20 = vector.load %arg2[%19, %c0_16, %c0_17] : memref<8x8x128xbf16, #tpu.memory_space<vmem>>, vector<1x8x128xbf16>
    %21 = vector.shape_cast %20 : vector<1x8x128xbf16> to vector<8x128xbf16>
    %22 = arith.truncf %9 : vector<8x32xf32> to vector<8x32xbf16>
    %cst_18 = arith.constant dense<0.000000e+00> : vector<8x128xf32>
    %23 = tpu.matmul %22, %6, %cst_18 {dimension_numbers = #tpu.dot_dimension_numbers<[1], [0], [0], [1], [0, 0, 1, 1], [], []>} : vector<8x32xbf16>, vector<32x128xbf16>, vector<8x128xf32> -> vector<8x128xf32>
    %24 = arith.extf %21 : vector<8x128xbf16> to vector<8x128xf32>
    %25 = arith.addf %24, %23 : vector<8x128xf32>
    %26 = vector.extract_strided_slice %18 {offsets = [0, 0], sizes = [8, 32], strides = [1, 1]} : vector<8x128xf32> to vector<8x32xf32>
    %cst_19 = arith.constant 5.000000e-01 : f32
    %27 = vector.broadcast %cst_19 : f32 to vector<8x32xf32>
    %28 = arith.mulf %27, %26 : vector<8x32xf32>
    %29 = math.tanh %28 : vector<8x32xf32>
    %cst_20 = arith.constant 5.000000e-01 : f32
    %30 = vector.broadcast %cst_20 : f32 to vector<8x32xf32>
    %31 = arith.mulf %30, %29 : vector<8x32xf32>
    %cst_21 = arith.constant 5.000000e-01 : f32
    %32 = vector.broadcast %cst_21 : f32 to vector<8x32xf32>
    %33 = arith.addf %31, %32 : vector<8x32xf32>
    %34 = vector.extract_strided_slice %18 {offsets = [0, 32], sizes = [8, 32], strides = [1, 1]} : vector<8x128xf32> to vector<8x32xf32>
    %cst_22 = arith.constant 5.000000e-01 : f32
    %35 = vector.broadcast %cst_22 : f32 to vector<8x32xf32>
    %36 = arith.mulf %35, %34 : vector<8x32xf32>
    %37 = math.tanh %36 : vector<8x32xf32>
    %cst_23 = arith.constant 5.000000e-01 : f32
    %38 = vector.broadcast %cst_23 : f32 to vector<8x32xf32>
    %39 = arith.mulf %38, %37 : vector<8x32xf32>
    %cst_24 = arith.constant 5.000000e-01 : f32
    %40 = vector.broadcast %cst_24 : f32 to vector<8x32xf32>
    %41 = arith.addf %39, %40 : vector<8x32xf32>
    %42 = vector.extract_strided_slice %18 {offsets = [0, 64], sizes = [8, 32], strides = [1, 1]} : vector<8x128xf32> to vector<8x32xf32>
    %43 = math.tanh %42 : vector<8x32xf32>
    %44 = vector.extract_strided_slice %18 {offsets = [0, 96], sizes = [8, 32], strides = [1, 1]} : vector<8x128xf32> to vector<8x32xf32>
    %cst_25 = arith.constant 5.000000e-01 : f32
    %45 = vector.broadcast %cst_25 : f32 to vector<8x32xf32>
    %46 = arith.mulf %45, %44 : vector<8x32xf32>
    %47 = math.tanh %46 : vector<8x32xf32>
    %cst_26 = arith.constant 5.000000e-01 : f32
    %48 = vector.broadcast %cst_26 : f32 to vector<8x32xf32>
    %49 = arith.mulf %48, %47 : vector<8x32xf32>
    %cst_27 = arith.constant 5.000000e-01 : f32
    %50 = vector.broadcast %cst_27 : f32 to vector<8x32xf32>
    %51 = arith.addf %49, %50 : vector<8x32xf32>
    %52 = arith.mulf %41, %8 : vector<8x32xf32>
    %53 = arith.mulf %33, %43 : vector<8x32xf32>
    %54 = arith.addf %52, %53 : vector<8x32xf32>
    %55 = math.tanh %54 : vector<8x32xf32>
    %56 = arith.mulf %51, %55 : vector<8x32xf32>
    %57 = vector.extract_strided_slice %25 {offsets = [0, 0], sizes = [8, 32], strides = [1, 1]} : vector<8x128xf32> to vector<8x32xf32>
    %cst_28 = arith.constant 5.000000e-01 : f32
    %58 = vector.broadcast %cst_28 : f32 to vector<8x32xf32>
    %59 = arith.mulf %58, %57 : vector<8x32xf32>
    %60 = math.tanh %59 : vector<8x32xf32>
    %cst_29 = arith.constant 5.000000e-01 : f32
    %61 = vector.broadcast %cst_29 : f32 to vector<8x32xf32>
    %62 = arith.mulf %61, %60 : vector<8x32xf32>
    %cst_30 = arith.constant 5.000000e-01 : f32
    %63 = vector.broadcast %cst_30 : f32 to vector<8x32xf32>
    %64 = arith.addf %62, %63 : vector<8x32xf32>
    %65 = vector.extract_strided_slice %25 {offsets = [0, 32], sizes = [8, 32], strides = [1, 1]} : vector<8x128xf32> to vector<8x32xf32>
    %cst_31 = arith.constant 5.000000e-01 : f32
    %66 = vector.broadcast %cst_31 : f32 to vector<8x32xf32>
    %67 = arith.mulf %66, %65 : vector<8x32xf32>
    %68 = math.tanh %67 : vector<8x32xf32>
    %cst_32 = arith.constant 5.000000e-01 : f32
    %69 = vector.broadcast %cst_32 : f32 to vector<8x32xf32>
    %70 = arith.mulf %69, %68 : vector<8x32xf32>
    %cst_33 = arith.constant 5.000000e-01 : f32
    %71 = vector.broadcast %cst_33 : f32 to vector<8x32xf32>
    %72 = arith.addf %70, %71 : vector<8x32xf32>
    %73 = vector.extract_strided_slice %25 {offsets = [0, 64], sizes = [8, 32], strides = [1, 1]} : vector<8x128xf32> to vector<8x32xf32>
    %74 = math.tanh %73 : vector<8x32xf32>
    %75 = vector.extract_strided_slice %25 {offsets = [0, 96], sizes = [8, 32], strides = [1, 1]} : vector<8x128xf32> to vector<8x32xf32>
    %cst_34 = arith.constant 5.000000e-01 : f32
    %76 = vector.broadcast %cst_34 : f32 to vector<8x32xf32>
    %77 = arith.mulf %76, %75 : vector<8x32xf32>
    %78 = math.tanh %77 : vector<8x32xf32>
    %cst_35 = arith.constant 5.000000e-01 : f32
    %79 = vector.broadcast %cst_35 : f32 to vector<8x32xf32>
    %80 = arith.mulf %79, %78 : vector<8x32xf32>
    %cst_36 = arith.constant 5.000000e-01 : f32
    %81 = vector.broadcast %cst_36 : f32 to vector<8x32xf32>
    %82 = arith.addf %80, %81 : vector<8x32xf32>
    %83 = arith.mulf %72, %10 : vector<8x32xf32>
    %84 = arith.mulf %64, %74 : vector<8x32xf32>
    %85 = arith.addf %83, %84 : vector<8x32xf32>
    %86 = math.tanh %85 : vector<8x32xf32>
    %87 = arith.mulf %82, %86 : vector<8x32xf32>
    %88 = arith.index_cast %c0_i32_13 : i32 to index
    %c0_37 = arith.constant 0 : index
    %c0_38 = arith.constant 0 : index
    %89 = vector.load %arg4[%88, %c0_37, %c0_38] : memref<8x8x32xf32, #tpu.memory_space<vmem>>, vector<1x8x32xf32>
    %90 = vector.shape_cast %89 : vector<1x8x32xf32> to vector<8x32xf32>
    %91 = vector.shape_cast %56 : vector<8x32xf32> to vector<1x8x32xf32>
    tpu.vector_store %arg4[%88, %c0_37, %c0_38], %91 {strides = array<i32>} : memref<8x8x32xf32, #tpu.memory_space<vmem>>, vector<1x8x32xf32>,
    %92 = arith.index_cast %11 : i32 to index
    %c0_39 = arith.constant 0 : index
    %c0_40 = arith.constant 0 : index
    %93 = vector.load %arg5[%92, %c0_39, %c0_40] : memref<8x8x32xf32, #tpu.memory_space<vmem>>, vector<1x8x32xf32>
    %94 = vector.shape_cast %93 : vector<1x8x32xf32> to vector<8x32xf32>
    %95 = vector.shape_cast %87 : vector<8x32xf32> to vector<1x8x32xf32>
    tpu.vector_store %arg5[%92, %c0_39, %c0_40], %95 {strides = array<i32>} : memref<8x8x32xf32, #tpu.memory_space<vmem>>, vector<1x8x32xf32>,
    %c1_i32 = arith.constant 1 : i32
    %c7_i32_41 = arith.constant 7 : i32
    %96 = arith.subi %c7_i32_41, %c1_i32 : i32
    %97 = arith.index_cast %c1_i32 : i32 to index
    %c0_42 = arith.constant 0 : index
    %c0_43 = arith.constant 0 : index
    %98 = vector.load %arg1[%97, %c0_42, %c0_43] : memref<8x8x128xbf16, #tpu.memory_space<vmem>>, vector<1x8x128xbf16>
    %99 = vector.shape_cast %98 : vector<1x8x128xbf16> to vector<8x128xbf16>
    %100 = arith.truncf %56 : vector<8x32xf32> to vector<8x32xbf16>
    %cst_44 = arith.constant dense<0.000000e+00> : vector<8x128xf32>
    %101 = tpu.matmul %100, %4, %cst_44 {dimension_numbers = #tpu.dot_dimension_numbers<[1], [0], [0], [1], [0, 0, 1, 1], [], []>} : vector<8x32xbf16>, vector<32x128xbf16>, vector<8x128xf32> -> vector<8x128xf32>
    %102 = arith.extf %99 : vector<8x128xbf16> to vector<8x128xf32>
    %103 = arith.addf %102, %101 : vector<8x128xf32>
    %104 = arith.index_cast %96 : i32 to index
    %c0_45 = arith.constant 0 : index
    %c0_46 = arith.constant 0 : index
    %105 = vector.load %arg2[%104, %c0_45, %c0_46] : memref<8x8x128xbf16, #tpu.memory_space<vmem>>, vector<1x8x128xbf16>
    %106 = vector.shape_cast %105 : vector<1x8x128xbf16> to vector<8x128xbf16>
    %107 = arith.truncf %87 : vector<8x32xf32> to vector<8x32xbf16>
    %cst_47 = arith.constant dense<0.000000e+00> : vector<8x128xf32>
    %108 = tpu.matmul %107, %6, %cst_47 {dimension_numbers = #tpu.dot_dimension_numbers<[1], [0], [0], [1], [0, 0, 1, 1], [], []>} : vector<8x32xbf16>, vector<32x128xbf16>, vector<8x128xf32> -> vector<8x128xf32>
    %109 = arith.extf %106 : vector<8x128xbf16> to vector<8x128xf32>
    %110 = arith.addf %109, %108 : vector<8x128xf32>
    %111 = vector.extract_strided_slice %103 {offsets = [0, 0], sizes = [8, 32], strides = [1, 1]} : vector<8x128xf32> to vector<8x32xf32>
    %cst_48 = arith.constant 5.000000e-01 : f32
    %112 = vector.broadcast %cst_48 : f32 to vector<8x32xf32>
    %113 = arith.mulf %112, %111 : vector<8x32xf32>
    %114 = math.tanh %113 : vector<8x32xf32>
    %cst_49 = arith.constant 5.000000e-01 : f32
    %115 = vector.broadcast %cst_49 : f32 to vector<8x32xf32>
    %116 = arith.mulf %115, %114 : vector<8x32xf32>
    %cst_50 = arith.constant 5.000000e-01 : f32
    %117 = vector.broadcast %cst_50 : f32 to vector<8x32xf32>
    %118 = arith.addf %116, %117 : vector<8x32xf32>
    %119 = vector.extract_strided_slice %103 {offsets = [0, 32], sizes = [8, 32], strides = [1, 1]} : vector<8x128xf32> to vector<8x32xf32>
    %cst_51 = arith.constant 5.000000e-01 : f32
    %120 = vector.broadcast %cst_51 : f32 to vector<8x32xf32>
    %121 = arith.mulf %120, %119 : vector<8x32xf32>
    %122 = math.tanh %121 : vector<8x32xf32>
    %cst_52 = arith.constant 5.000000e-01 : f32
    %123 = vector.broadcast %cst_52 : f32 to vector<8x32xf32>
    %124 = arith.mulf %123, %122 : vector<8x32xf32>
    %cst_53 = arith.constant 5.000000e-01 : f32
    %125 = vector.broadcast %cst_53 : f32 to vector<8x32xf32>
    %126 = arith.addf %124, %125 : vector<8x32xf32>
    %127 = vector.extract_strided_slice %103 {offsets = [0, 64], sizes = [8, 32], strides = [1, 1]} : vector<8x128xf32> to vector<8x32xf32>
    %128 = math.tanh %127 : vector<8x32xf32>
    %129 = vector.extract_strided_slice %103 {offsets = [0, 96], sizes = [8, 32], strides = [1, 1]} : vector<8x128xf32> to vector<8x32xf32>
    %cst_54 = arith.constant 5.000000e-01 : f32
    %130 = vector.broadcast %cst_54 : f32 to vector<8x32xf32>
    %131 = arith.mulf %130, %129 : vector<8x32xf32>
    %132 = math.tanh %131 : vector<8x32xf32>
    %cst_55 = arith.constant 5.000000e-01 : f32
    %133 = vector.broadcast %cst_55 : f32 to vector<8x32xf32>
    %134 = arith.mulf %133, %132 : vector<8x32xf32>
    %cst_56 = arith.constant 5.000000e-01 : f32
    %135 = vector.broadcast %cst_56 : f32 to vector<8x32xf32>
    %136 = arith.addf %134, %135 : vector<8x32xf32>
    %137 = arith.mulf %126, %54 : vector<8x32xf32>
    %138 = arith.mulf %118, %128 : vector<8x32xf32>
    %139 = arith.addf %137, %138 : vector<8x32xf32>
    %140 = math.tanh %139 : vector<8x32xf32>
    %141 = arith.mulf %136, %140 : vector<8x32xf32>
    %142 = vector.extract_strided_slice %110 {offsets = [0, 0], sizes = [8, 32], strides = [1, 1]} : vector<8x128xf32> to vector<8x32xf32>
    %cst_57 = arith.constant 5.000000e-01 : f32
    %143 = vector.broadcast %cst_57 : f32 to vector<8x32xf32>
    %144 = arith.mulf %143, %142 : vector<8x32xf32>
    %145 = math.tanh %144 : vector<8x32xf32>
    %cst_58 = arith.constant 5.000000e-01 : f32
    %146 = vector.broadcast %cst_58 : f32 to vector<8x32xf32>
    %147 = arith.mulf %146, %145 : vector<8x32xf32>
    %cst_59 = arith.constant 5.000000e-01 : f32
    %148 = vector.broadcast %cst_59 : f32 to vector<8x32xf32>
    %149 = arith.addf %147, %148 : vector<8x32xf32>
    %150 = vector.extract_strided_slice %110 {offsets = [0, 32], sizes = [8, 32], strides = [1, 1]} : vector<8x128xf32> to vector<8x32xf32>
    %cst_60 = arith.constant 5.000000e-01 : f32
    %151 = vector.broadcast %cst_60 : f32 to vector<8x32xf32>
    %152 = arith.mulf %151, %150 : vector<8x32xf32>
    %153 = math.tanh %152 : vector<8x32xf32>
    %cst_61 = arith.constant 5.000000e-01 : f32
    %154 = vector.broadcast %cst_61 : f32 to vector<8x32xf32>
    %155 = arith.mulf %154, %153 : vector<8x32xf32>
    %cst_62 = arith.constant 5.000000e-01 : f32
    %156 = vector.broadcast %cst_62 : f32 to vector<8x32xf32>
    %157 = arith.addf %155, %156 : vector<8x32xf32>
    %158 = vector.extract_strided_slice %110 {offsets = [0, 64], sizes = [8, 32], strides = [1, 1]} : vector<8x128xf32> to vector<8x32xf32>
    %159 = math.tanh %158 : vector<8x32xf32>
    %160 = vector.extract_strided_slice %110 {offsets = [0, 96], sizes = [8, 32], strides = [1, 1]} : vector<8x128xf32> to vector<8x32xf32>
    %cst_63 = arith.constant 5.000000e-01 : f32
    %161 = vector.broadcast %cst_63 : f32 to vector<8x32xf32>
    %162 = arith.mulf %161, %160 : vector<8x32xf32>
    %163 = math.tanh %162 : vector<8x32xf32>
    %cst_64 = arith.constant 5.000000e-01 : f32
    %164 = vector.broadcast %cst_64 : f32 to vector<8x32xf32>
    %165 = arith.mulf %164, %163 : vector<8x32xf32>
    %cst_65 = arith.constant 5.000000e-01 : f32
    %166 = vector.broadcast %cst_65 : f32 to vector<8x32xf32>
    %167 = arith.addf %165, %166 : vector<8x32xf32>
    %168 = arith.mulf %157, %85 : vector<8x32xf32>
    %169 = arith.mulf %149, %159 : vector<8x32xf32>
    %170 = arith.addf %168, %169 : vector<8x32xf32>
    %171 = math.tanh %170 : vector<8x32xf32>
    %172 = arith.mulf %167, %171 : vector<8x32xf32>
    %173 = arith.index_cast %c1_i32 : i32 to index
    %c0_66 = arith.constant 0 : index
    %c0_67 = arith.constant 0 : index
    %174 = vector.load %arg4[%173, %c0_66, %c0_67] : memref<8x8x32xf32, #tpu.memory_space<vmem>>, vector<1x8x32xf32>
    %175 = vector.shape_cast %174 : vector<1x8x32xf32> to vector<8x32xf32>
    %176 = vector.shape_cast %141 : vector<8x32xf32> to vector<1x8x32xf32>
    tpu.vector_store %arg4[%173, %c0_66, %c0_67], %176 {strides = array<i32>} : memref<8x8x32xf32, #tpu.memory_space<vmem>>, vector<1x8x32xf32>,
    %177 = arith.index_cast %96 : i32 to index
    %c0_68 = arith.constant 0 : index
    %c0_69 = arith.constant 0 : index
    %178 = vector.load %arg5[%177, %c0_68, %c0_69] : memref<8x8x32xf32, #tpu.memory_space<vmem>>, vector<1x8x32xf32>
    %179 = vector.shape_cast %178 : vector<1x8x32xf32> to vector<8x32xf32>
    %180 = vector.shape_cast %172 : vector<8x32xf32> to vector<1x8x32xf32>
    tpu.vector_store %arg5[%177, %c0_68, %c0_69], %180 {strides = array<i32>} : memref<8x8x32xf32, #tpu.memory_space<vmem>>, vector<1x8x32xf32>,
    %c2_i32 = arith.constant 2 : i32
    %c7_i32_70 = arith.constant 7 : i32
    %181 = arith.subi %c7_i32_70, %c2_i32 : i32
    %182 = arith.index_cast %c2_i32 : i32 to index
    %c0_71 = arith.constant 0 : index
    %c0_72 = arith.constant 0 : index
    %183 = vector.load %arg1[%182, %c0_71, %c0_72] : memref<8x8x128xbf16, #tpu.memory_space<vmem>>, vector<1x8x128xbf16>
    %184 = vector.shape_cast %183 : vector<1x8x128xbf16> to vector<8x128xbf16>
    %185 = arith.truncf %141 : vector<8x32xf32> to vector<8x32xbf16>
    %cst_73 = arith.constant dense<0.000000e+00> : vector<8x128xf32>
    %186 = tpu.matmul %185, %4, %cst_73 {dimension_numbers = #tpu.dot_dimension_numbers<[1], [0], [0], [1], [0, 0, 1, 1], [], []>} : vector<8x32xbf16>, vector<32x128xbf16>, vector<8x128xf32> -> vector<8x128xf32>
    %187 = arith.extf %184 : vector<8x128xbf16> to vector<8x128xf32>
    %188 = arith.addf %187, %186 : vector<8x128xf32>
    %189 = arith.index_cast %181 : i32 to index
    %c0_74 = arith.constant 0 : index
    %c0_75 = arith.constant 0 : index
    %190 = vector.load %arg2[%189, %c0_74, %c0_75] : memref<8x8x128xbf16, #tpu.memory_space<vmem>>, vector<1x8x128xbf16>
    %191 = vector.shape_cast %190 : vector<1x8x128xbf16> to vector<8x128xbf16>
    %192 = arith.truncf %172 : vector<8x32xf32> to vector<8x32xbf16>
    %cst_76 = arith.constant dense<0.000000e+00> : vector<8x128xf32>
    %193 = tpu.matmul %192, %6, %cst_76 {dimension_numbers = #tpu.dot_dimension_numbers<[1], [0], [0], [1], [0, 0, 1, 1], [], []>} : vector<8x32xbf16>, vector<32x128xbf16>, vector<8x128xf32> -> vector<8x128xf32>
    %194 = arith.extf %191 : vector<8x128xbf16> to vector<8x128xf32>
    %195 = arith.addf %194, %193 : vector<8x128xf32>
    %196 = vector.extract_strided_slice %188 {offsets = [0, 0], sizes = [8, 32], strides = [1, 1]} : vector<8x128xf32> to vector<8x32xf32>
    %cst_77 = arith.constant 5.000000e-01 : f32
    %197 = vector.broadcast %cst_77 : f32 to vector<8x32xf32>
    %198 = arith.mulf %197, %196 : vector<8x32xf32>
    %199 = math.tanh %198 : vector<8x32xf32>
    %cst_78 = arith.constant 5.000000e-01 : f32
    %200 = vector.broadcast %cst_78 : f32 to vector<8x32xf32>
    %201 = arith.mulf %200, %199 : vector<8x32xf32>
    %cst_79 = arith.constant 5.000000e-01 : f32
    %202 = vector.broadcast %cst_79 : f32 to vector<8x32xf32>
    %203 = arith.addf %201, %202 : vector<8x32xf32>
    %204 = vector.extract_strided_slice %188 {offsets = [0, 32], sizes = [8, 32], strides = [1, 1]} : vector<8x128xf32> to vector<8x32xf32>
    %cst_80 = arith.constant 5.000000e-01 : f32
    %205 = vector.broadcast %cst_80 : f32 to vector<8x32xf32>
    %206 = arith.mulf %205, %204 : vector<8x32xf32>
    %207 = math.tanh %206 : vector<8x32xf32>
    %cst_81 = arith.constant 5.000000e-01 : f32
    %208 = vector.broadcast %cst_81 : f32 to vector<8x32xf32>
    %209 = arith.mulf %208, %207 : vector<8x32xf32>
    %cst_82 = arith.constant 5.000000e-01 : f32
    %210 = vector.broadcast %cst_82 : f32 to vector<8x32xf32>
    %211 = arith.addf %209, %210 : vector<8x32xf32>
    %212 = vector.extract_strided_slice %188 {offsets = [0, 64], sizes = [8, 32], strides = [1, 1]} : vector<8x128xf32> to vector<8x32xf32>
    %213 = math.tanh %212 : vector<8x32xf32>
    %214 = vector.extract_strided_slice %188 {offsets = [0, 96], sizes = [8, 32], strides = [1, 1]} : vector<8x128xf32> to vector<8x32xf32>
    %cst_83 = arith.constant 5.000000e-01 : f32
    %215 = vector.broadcast %cst_83 : f32 to vector<8x32xf32>
    %216 = arith.mulf %215, %214 : vector<8x32xf32>
    %217 = math.tanh %216 : vector<8x32xf32>
    %cst_84 = arith.constant 5.000000e-01 : f32
    %218 = vector.broadcast %cst_84 : f32 to vector<8x32xf32>
    %219 = arith.mulf %218, %217 : vector<8x32xf32>
    %cst_85 = arith.constant 5.000000e-01 : f32
    %220 = vector.broadcast %cst_85 : f32 to vector<8x32xf32>
    %221 = arith.addf %219, %220 : vector<8x32xf32>
    %222 = arith.mulf %211, %139 : vector<8x32xf32>
    %223 = arith.mulf %203, %213 : vector<8x32xf32>
    %224 = arith.addf %222, %223 : vector<8x32xf32>
    %225 = math.tanh %224 : vector<8x32xf32>
    %226 = arith.mulf %221, %225 : vector<8x32xf32>
    %227 = vector.extract_strided_slice %195 {offsets = [0, 0], sizes = [8, 32], strides = [1, 1]} : vector<8x128xf32> to vector<8x32xf32>
    %cst_86 = arith.constant 5.000000e-01 : f32
    %228 = vector.broadcast %cst_86 : f32 to vector<8x32xf32>
    %229 = arith.mulf %228, %227 : vector<8x32xf32>
    %230 = math.tanh %229 : vector<8x32xf32>
    %cst_87 = arith.constant 5.000000e-01 : f32
    %231 = vector.broadcast %cst_87 : f32 to vector<8x32xf32>
    %232 = arith.mulf %231, %230 : vector<8x32xf32>
    %cst_88 = arith.constant 5.000000e-01 : f32
    %233 = vector.broadcast %cst_88 : f32 to vector<8x32xf32>
    %234 = arith.addf %232, %233 : vector<8x32xf32>
    %235 = vector.extract_strided_slice %195 {offsets = [0, 32], sizes = [8, 32], strides = [1, 1]} : vector<8x128xf32> to vector<8x32xf32>
    %cst_89 = arith.constant 5.000000e-01 : f32
    %236 = vector.broadcast %cst_89 : f32 to vector<8x32xf32>
    %237 = arith.mulf %236, %235 : vector<8x32xf32>
    %238 = math.tanh %237 : vector<8x32xf32>
    %cst_90 = arith.constant 5.000000e-01 : f32
    %239 = vector.broadcast %cst_90 : f32 to vector<8x32xf32>
    %240 = arith.mulf %239, %238 : vector<8x32xf32>
    %cst_91 = arith.constant 5.000000e-01 : f32
    %241 = vector.broadcast %cst_91 : f32 to vector<8x32xf32>
    %242 = arith.addf %240, %241 : vector<8x32xf32>
    %243 = vector.extract_strided_slice %195 {offsets = [0, 64], sizes = [8, 32], strides = [1, 1]} : vector<8x128xf32> to vector<8x32xf32>
    %244 = math.tanh %243 : vector<8x32xf32>
    %245 = vector.extract_strided_slice %195 {offsets = [0, 96], sizes = [8, 32], strides = [1, 1]} : vector<8x128xf32> to vector<8x32xf32>
    %cst_92 = arith.constant 5.000000e-01 : f32
    %246 = vector.broadcast %cst_92 : f32 to vector<8x32xf32>
    %247 = arith.mulf %246, %245 : vector<8x32xf32>
    %248 = math.tanh %247 : vector<8x32xf32>
    %cst_93 = arith.constant 5.000000e-01 : f32
    %249 = vector.broadcast %cst_93 : f32 to vector<8x32xf32>
    %250 = arith.mulf %249, %248 : vector<8x32xf32>
    %cst_94 = arith.constant 5.000000e-01 : f32
    %251 = vector.broadcast %cst_94 : f32 to vector<8x32xf32>
    %252 = arith.addf %250, %251 : vector<8x32xf32>
    %253 = arith.mulf %242, %170 : vector<8x32xf32>
    %254 = arith.mulf %234, %244 : vector<8x32xf32>
    %255 = arith.addf %253, %254 : vector<8x32xf32>
    %256 = math.tanh %255 : vector<8x32xf32>
    %257 = arith.mulf %252, %256 : vector<8x32xf32>
    %258 = arith.index_cast %c2_i32 : i32 to index
    %c0_95 = arith.constant 0 : index
    %c0_96 = arith.constant 0 : index
    %259 = vector.load %arg4[%258, %c0_95, %c0_96] : memref<8x8x32xf32, #tpu.memory_space<vmem>>, vector<1x8x32xf32>
    %260 = vector.shape_cast %259 : vector<1x8x32xf32> to vector<8x32xf32>
    %261 = vector.shape_cast %226 : vector<8x32xf32> to vector<1x8x32xf32>
    tpu.vector_store %arg4[%258, %c0_95, %c0_96], %261 {strides = array<i32>} : memref<8x8x32xf32, #tpu.memory_space<vmem>>, vector<1x8x32xf32>,
    %262 = arith.index_cast %181 : i32 to index
    %c0_97 = arith.constant 0 : index
    %c0_98 = arith.constant 0 : index
    %263 = vector.load %arg5[%262, %c0_97, %c0_98] : memref<8x8x32xf32, #tpu.memory_space<vmem>>, vector<1x8x32xf32>
    %264 = vector.shape_cast %263 : vector<1x8x32xf32> to vector<8x32xf32>
    %265 = vector.shape_cast %257 : vector<8x32xf32> to vector<1x8x32xf32>
    tpu.vector_store %arg5[%262, %c0_97, %c0_98], %265 {strides = array<i32>} : memref<8x8x32xf32, #tpu.memory_space<vmem>>, vector<1x8x32xf32>,
    %c3_i32 = arith.constant 3 : i32
    %c7_i32_99 = arith.constant 7 : i32
    %266 = arith.subi %c7_i32_99, %c3_i32 : i32
    %267 = arith.index_cast %c3_i32 : i32 to index
    %c0_100 = arith.constant 0 : index
    %c0_101 = arith.constant 0 : index
    %268 = vector.load %arg1[%267, %c0_100, %c0_101] : memref<8x8x128xbf16, #tpu.memory_space<vmem>>, vector<1x8x128xbf16>
    %269 = vector.shape_cast %268 : vector<1x8x128xbf16> to vector<8x128xbf16>
    %270 = arith.truncf %226 : vector<8x32xf32> to vector<8x32xbf16>
    %cst_102 = arith.constant dense<0.000000e+00> : vector<8x128xf32>
    %271 = tpu.matmul %270, %4, %cst_102 {dimension_numbers = #tpu.dot_dimension_numbers<[1], [0], [0], [1], [0, 0, 1, 1], [], []>} : vector<8x32xbf16>, vector<32x128xbf16>, vector<8x128xf32> -> vector<8x128xf32>
    %272 = arith.extf %269 : vector<8x128xbf16> to vector<8x128xf32>
    %273 = arith.addf %272, %271 : vector<8x128xf32>
    %274 = arith.index_cast %266 : i32 to index
    %c0_103 = arith.constant 0 : index
    %c0_104 = arith.constant 0 : index
    %275 = vector.load %arg2[%274, %c0_103, %c0_104] : memref<8x8x128xbf16, #tpu.memory_space<vmem>>, vector<1x8x128xbf16>
    %276 = vector.shape_cast %275 : vector<1x8x128xbf16> to vector<8x128xbf16>
    %277 = arith.truncf %257 : vector<8x32xf32> to vector<8x32xbf16>
    %cst_105 = arith.constant dense<0.000000e+00> : vector<8x128xf32>
    %278 = tpu.matmul %277, %6, %cst_105 {dimension_numbers = #tpu.dot_dimension_numbers<[1], [0], [0], [1], [0, 0, 1, 1], [], []>} : vector<8x32xbf16>, vector<32x128xbf16>, vector<8x128xf32> -> vector<8x128xf32>
    %279 = arith.extf %276 : vector<8x128xbf16> to vector<8x128xf32>
    %280 = arith.addf %279, %278 : vector<8x128xf32>
    %281 = vector.extract_strided_slice %273 {offsets = [0, 0], sizes = [8, 32], strides = [1, 1]} : vector<8x128xf32> to vector<8x32xf32>
    %cst_106 = arith.constant 5.000000e-01 : f32
    %282 = vector.broadcast %cst_106 : f32 to vector<8x32xf32>
    %283 = arith.mulf %282, %281 : vector<8x32xf32>
    %284 = math.tanh %283 : vector<8x32xf32>
    %cst_107 = arith.constant 5.000000e-01 : f32
    %285 = vector.broadcast %cst_107 : f32 to vector<8x32xf32>
    %286 = arith.mulf %285, %284 : vector<8x32xf32>
    %cst_108 = arith.constant 5.000000e-01 : f32
    %287 = vector.broadcast %cst_108 : f32 to vector<8x32xf32>
    %288 = arith.addf %286, %287 : vector<8x32xf32>
    %289 = vector.extract_strided_slice %273 {offsets = [0, 32], sizes = [8, 32], strides = [1, 1]} : vector<8x128xf32> to vector<8x32xf32>
    %cst_109 = arith.constant 5.000000e-01 : f32
    %290 = vector.broadcast %cst_109 : f32 to vector<8x32xf32>
    %291 = arith.mulf %290, %289 : vector<8x32xf32>
    %292 = math.tanh %291 : vector<8x32xf32>
    %cst_110 = arith.constant 5.000000e-01 : f32
    %293 = vector.broadcast %cst_110 : f32 to vector<8x32xf32>
    %294 = arith.mulf %293, %292 : vector<8x32xf32>
    %cst_111 = arith.constant 5.000000e-01 : f32
    %295 = vector.broadcast %cst_111 : f32 to vector<8x32xf32>
    %296 = arith.addf %294, %295 : vector<8x32xf32>
    %297 = vector.extract_strided_slice %273 {offsets = [0, 64], sizes = [8, 32], strides = [1, 1]} : vector<8x128xf32> to vector<8x32xf32>
    %298 = math.tanh %297 : vector<8x32xf32>
    %299 = vector.extract_strided_slice %273 {offsets = [0, 96], sizes = [8, 32], strides = [1, 1]} : vector<8x128xf32> to vector<8x32xf32>
    %cst_112 = arith.constant 5.000000e-01 : f32
    %300 = vector.broadcast %cst_112 : f32 to vector<8x32xf32>
    %301 = arith.mulf %300, %299 : vector<8x32xf32>
    %302 = math.tanh %301 : vector<8x32xf32>
    %cst_113 = arith.constant 5.000000e-01 : f32
    %303 = vector.broadcast %cst_113 : f32 to vector<8x32xf32>
    %304 = arith.mulf %303, %302 : vector<8x32xf32>
    %cst_114 = arith.constant 5.000000e-01 : f32
    %305 = vector.broadcast %cst_114 : f32 to vector<8x32xf32>
    %306 = arith.addf %304, %305 : vector<8x32xf32>
    %307 = arith.mulf %296, %224 : vector<8x32xf32>
    %308 = arith.mulf %288, %298 : vector<8x32xf32>
    %309 = arith.addf %307, %308 : vector<8x32xf32>
    %310 = math.tanh %309 : vector<8x32xf32>
    %311 = arith.mulf %306, %310 : vector<8x32xf32>
    %312 = vector.extract_strided_slice %280 {offsets = [0, 0], sizes = [8, 32], strides = [1, 1]} : vector<8x128xf32> to vector<8x32xf32>
    %cst_115 = arith.constant 5.000000e-01 : f32
    %313 = vector.broadcast %cst_115 : f32 to vector<8x32xf32>
    %314 = arith.mulf %313, %312 : vector<8x32xf32>
    %315 = math.tanh %314 : vector<8x32xf32>
    %cst_116 = arith.constant 5.000000e-01 : f32
    %316 = vector.broadcast %cst_116 : f32 to vector<8x32xf32>
    %317 = arith.mulf %316, %315 : vector<8x32xf32>
    %cst_117 = arith.constant 5.000000e-01 : f32
    %318 = vector.broadcast %cst_117 : f32 to vector<8x32xf32>
    %319 = arith.addf %317, %318 : vector<8x32xf32>
    %320 = vector.extract_strided_slice %280 {offsets = [0, 32], sizes = [8, 32], strides = [1, 1]} : vector<8x128xf32> to vector<8x32xf32>
    %cst_118 = arith.constant 5.000000e-01 : f32
    %321 = vector.broadcast %cst_118 : f32 to vector<8x32xf32>
    %322 = arith.mulf %321, %320 : vector<8x32xf32>
    %323 = math.tanh %322 : vector<8x32xf32>
    %cst_119 = arith.constant 5.000000e-01 : f32
    %324 = vector.broadcast %cst_119 : f32 to vector<8x32xf32>
    %325 = arith.mulf %324, %323 : vector<8x32xf32>
    %cst_120 = arith.constant 5.000000e-01 : f32
    %326 = vector.broadcast %cst_120 : f32 to vector<8x32xf32>
    %327 = arith.addf %325, %326 : vector<8x32xf32>
    %328 = vector.extract_strided_slice %280 {offsets = [0, 64], sizes = [8, 32], strides = [1, 1]} : vector<8x128xf32> to vector<8x32xf32>
    %329 = math.tanh %328 : vector<8x32xf32>
    %330 = vector.extract_strided_slice %280 {offsets = [0, 96], sizes = [8, 32], strides = [1, 1]} : vector<8x128xf32> to vector<8x32xf32>
    %cst_121 = arith.constant 5.000000e-01 : f32
    %331 = vector.broadcast %cst_121 : f32 to vector<8x32xf32>
    %332 = arith.mulf %331, %330 : vector<8x32xf32>
    %333 = math.tanh %332 : vector<8x32xf32>
    %cst_122 = arith.constant 5.000000e-01 : f32
    %334 = vector.broadcast %cst_122 : f32 to vector<8x32xf32>
    %335 = arith.mulf %334, %333 : vector<8x32xf32>
    %cst_123 = arith.constant 5.000000e-01 : f32
    %336 = vector.broadcast %cst_123 : f32 to vector<8x32xf32>
    %337 = arith.addf %335, %336 : vector<8x32xf32>
    %338 = arith.mulf %327, %255 : vector<8x32xf32>
    %339 = arith.mulf %319, %329 : vector<8x32xf32>
    %340 = arith.addf %338, %339 : vector<8x32xf32>
    %341 = math.tanh %340 : vector<8x32xf32>
    %342 = arith.mulf %337, %341 : vector<8x32xf32>
    %343 = arith.index_cast %c3_i32 : i32 to index
    %c0_124 = arith.constant 0 : index
    %c0_125 = arith.constant 0 : index
    %344 = vector.load %arg4[%343, %c0_124, %c0_125] : memref<8x8x32xf32, #tpu.memory_space<vmem>>, vector<1x8x32xf32>
    %345 = vector.shape_cast %344 : vector<1x8x32xf32> to vector<8x32xf32>
    %346 = vector.shape_cast %311 : vector<8x32xf32> to vector<1x8x32xf32>
    tpu.vector_store %arg4[%343, %c0_124, %c0_125], %346 {strides = array<i32>} : memref<8x8x32xf32, #tpu.memory_space<vmem>>, vector<1x8x32xf32>,
    %347 = arith.index_cast %266 : i32 to index
    %c0_126 = arith.constant 0 : index
    %c0_127 = arith.constant 0 : index
    %348 = vector.load %arg5[%347, %c0_126, %c0_127] : memref<8x8x32xf32, #tpu.memory_space<vmem>>, vector<1x8x32xf32>
    %349 = vector.shape_cast %348 : vector<1x8x32xf32> to vector<8x32xf32>
    %350 = vector.shape_cast %342 : vector<8x32xf32> to vector<1x8x32xf32>
    tpu.vector_store %arg5[%347, %c0_126, %c0_127], %350 {strides = array<i32>} : memref<8x8x32xf32, #tpu.memory_space<vmem>>, vector<1x8x32xf32>,
    %c4_i32 = arith.constant 4 : i32
    %c7_i32_128 = arith.constant 7 : i32
    %351 = arith.subi %c7_i32_128, %c4_i32 : i32
    %352 = arith.index_cast %c4_i32 : i32 to index
    %c0_129 = arith.constant 0 : index
    %c0_130 = arith.constant 0 : index
    %353 = vector.load %arg1[%352, %c0_129, %c0_130] : memref<8x8x128xbf16, #tpu.memory_space<vmem>>, vector<1x8x128xbf16>
    %354 = vector.shape_cast %353 : vector<1x8x128xbf16> to vector<8x128xbf16>
    %355 = arith.truncf %311 : vector<8x32xf32> to vector<8x32xbf16>
    %cst_131 = arith.constant dense<0.000000e+00> : vector<8x128xf32>
    %356 = tpu.matmul %355, %4, %cst_131 {dimension_numbers = #tpu.dot_dimension_numbers<[1], [0], [0], [1], [0, 0, 1, 1], [], []>} : vector<8x32xbf16>, vector<32x128xbf16>, vector<8x128xf32> -> vector<8x128xf32>
    %357 = arith.extf %354 : vector<8x128xbf16> to vector<8x128xf32>
    %358 = arith.addf %357, %356 : vector<8x128xf32>
    %359 = arith.index_cast %351 : i32 to index
    %c0_132 = arith.constant 0 : index
    %c0_133 = arith.constant 0 : index
    %360 = vector.load %arg2[%359, %c0_132, %c0_133] : memref<8x8x128xbf16, #tpu.memory_space<vmem>>, vector<1x8x128xbf16>
    %361 = vector.shape_cast %360 : vector<1x8x128xbf16> to vector<8x128xbf16>
    %362 = arith.truncf %342 : vector<8x32xf32> to vector<8x32xbf16>
    %cst_134 = arith.constant dense<0.000000e+00> : vector<8x128xf32>
    %363 = tpu.matmul %362, %6, %cst_134 {dimension_numbers = #tpu.dot_dimension_numbers<[1], [0], [0], [1], [0, 0, 1, 1], [], []>} : vector<8x32xbf16>, vector<32x128xbf16>, vector<8x128xf32> -> vector<8x128xf32>
    %364 = arith.extf %361 : vector<8x128xbf16> to vector<8x128xf32>
    %365 = arith.addf %364, %363 : vector<8x128xf32>
    %366 = vector.extract_strided_slice %358 {offsets = [0, 0], sizes = [8, 32], strides = [1, 1]} : vector<8x128xf32> to vector<8x32xf32>
    %cst_135 = arith.constant 5.000000e-01 : f32
    %367 = vector.broadcast %cst_135 : f32 to vector<8x32xf32>
    %368 = arith.mulf %367, %366 : vector<8x32xf32>
    %369 = math.tanh %368 : vector<8x32xf32>
    %cst_136 = arith.constant 5.000000e-01 : f32
    %370 = vector.broadcast %cst_136 : f32 to vector<8x32xf32>
    %371 = arith.mulf %370, %369 : vector<8x32xf32>
    %cst_137 = arith.constant 5.000000e-01 : f32
    %372 = vector.broadcast %cst_137 : f32 to vector<8x32xf32>
    %373 = arith.addf %371, %372 : vector<8x32xf32>
    %374 = vector.extract_strided_slice %358 {offsets = [0, 32], sizes = [8, 32], strides = [1, 1]} : vector<8x128xf32> to vector<8x32xf32>
    %cst_138 = arith.constant 5.000000e-01 : f32
    %375 = vector.broadcast %cst_138 : f32 to vector<8x32xf32>
    %376 = arith.mulf %375, %374 : vector<8x32xf32>
    %377 = math.tanh %376 : vector<8x32xf32>
    %cst_139 = arith.constant 5.000000e-01 : f32
    %378 = vector.broadcast %cst_139 : f32 to vector<8x32xf32>
    %379 = arith.mulf %378, %377 : vector<8x32xf32>
    %cst_140 = arith.constant 5.000000e-01 : f32
    %380 = vector.broadcast %cst_140 : f32 to vector<8x32xf32>
    %381 = arith.addf %379, %380 : vector<8x32xf32>
    %382 = vector.extract_strided_slice %358 {offsets = [0, 64], sizes = [8, 32], strides = [1, 1]} : vector<8x128xf32> to vector<8x32xf32>
    %383 = math.tanh %382 : vector<8x32xf32>
    %384 = vector.extract_strided_slice %358 {offsets = [0, 96], sizes = [8, 32], strides = [1, 1]} : vector<8x128xf32> to vector<8x32xf32>
    %cst_141 = arith.constant 5.000000e-01 : f32
    %385 = vector.broadcast %cst_141 : f32 to vector<8x32xf32>
    %386 = arith.mulf %385, %384 : vector<8x32xf32>
    %387 = math.tanh %386 : vector<8x32xf32>
    %cst_142 = arith.constant 5.000000e-01 : f32
    %388 = vector.broadcast %cst_142 : f32 to vector<8x32xf32>
    %389 = arith.mulf %388, %387 : vector<8x32xf32>
    %cst_143 = arith.constant 5.000000e-01 : f32
    %390 = vector.broadcast %cst_143 : f32 to vector<8x32xf32>
    %391 = arith.addf %389, %390 : vector<8x32xf32>
    %392 = arith.mulf %381, %309 : vector<8x32xf32>
    %393 = arith.mulf %373, %383 : vector<8x32xf32>
    %394 = arith.addf %392, %393 : vector<8x32xf32>
    %395 = math.tanh %394 : vector<8x32xf32>
    %396 = arith.mulf %391, %395 : vector<8x32xf32>
    %397 = vector.extract_strided_slice %365 {offsets = [0, 0], sizes = [8, 32], strides = [1, 1]} : vector<8x128xf32> to vector<8x32xf32>
    %cst_144 = arith.constant 5.000000e-01 : f32
    %398 = vector.broadcast %cst_144 : f32 to vector<8x32xf32>
    %399 = arith.mulf %398, %397 : vector<8x32xf32>
    %400 = math.tanh %399 : vector<8x32xf32>
    %cst_145 = arith.constant 5.000000e-01 : f32
    %401 = vector.broadcast %cst_145 : f32 to vector<8x32xf32>
    %402 = arith.mulf %401, %400 : vector<8x32xf32>
    %cst_146 = arith.constant 5.000000e-01 : f32
    %403 = vector.broadcast %cst_146 : f32 to vector<8x32xf32>
    %404 = arith.addf %402, %403 : vector<8x32xf32>
    %405 = vector.extract_strided_slice %365 {offsets = [0, 32], sizes = [8, 32], strides = [1, 1]} : vector<8x128xf32> to vector<8x32xf32>
    %cst_147 = arith.constant 5.000000e-01 : f32
    %406 = vector.broadcast %cst_147 : f32 to vector<8x32xf32>
    %407 = arith.mulf %406, %405 : vector<8x32xf32>
    %408 = math.tanh %407 : vector<8x32xf32>
    %cst_148 = arith.constant 5.000000e-01 : f32
    %409 = vector.broadcast %cst_148 : f32 to vector<8x32xf32>
    %410 = arith.mulf %409, %408 : vector<8x32xf32>
    %cst_149 = arith.constant 5.000000e-01 : f32
    %411 = vector.broadcast %cst_149 : f32 to vector<8x32xf32>
    %412 = arith.addf %410, %411 : vector<8x32xf32>
    %413 = vector.extract_strided_slice %365 {offsets = [0, 64], sizes = [8, 32], strides = [1, 1]} : vector<8x128xf32> to vector<8x32xf32>
    %414 = math.tanh %413 : vector<8x32xf32>
    %415 = vector.extract_strided_slice %365 {offsets = [0, 96], sizes = [8, 32], strides = [1, 1]} : vector<8x128xf32> to vector<8x32xf32>
    %cst_150 = arith.constant 5.000000e-01 : f32
    %416 = vector.broadcast %cst_150 : f32 to vector<8x32xf32>
    %417 = arith.mulf %416, %415 : vector<8x32xf32>
    %418 = math.tanh %417 : vector<8x32xf32>
    %cst_151 = arith.constant 5.000000e-01 : f32
    %419 = vector.broadcast %cst_151 : f32 to vector<8x32xf32>
    %420 = arith.mulf %419, %418 : vector<8x32xf32>
    %cst_152 = arith.constant 5.000000e-01 : f32
    %421 = vector.broadcast %cst_152 : f32 to vector<8x32xf32>
    %422 = arith.addf %420, %421 : vector<8x32xf32>
    %423 = arith.mulf %412, %340 : vector<8x32xf32>
    %424 = arith.mulf %404, %414 : vector<8x32xf32>
    %425 = arith.addf %423, %424 : vector<8x32xf32>
    %426 = math.tanh %425 : vector<8x32xf32>
    %427 = arith.mulf %422, %426 : vector<8x32xf32>
    %428 = arith.index_cast %c4_i32 : i32 to index
    %c0_153 = arith.constant 0 : index
    %c0_154 = arith.constant 0 : index
    %429 = vector.load %arg4[%428, %c0_153, %c0_154] : memref<8x8x32xf32, #tpu.memory_space<vmem>>, vector<1x8x32xf32>
    %430 = vector.shape_cast %429 : vector<1x8x32xf32> to vector<8x32xf32>
    %431 = vector.shape_cast %396 : vector<8x32xf32> to vector<1x8x32xf32>
    tpu.vector_store %arg4[%428, %c0_153, %c0_154], %431 {strides = array<i32>} : memref<8x8x32xf32, #tpu.memory_space<vmem>>, vector<1x8x32xf32>,
    %432 = arith.index_cast %351 : i32 to index
    %c0_155 = arith.constant 0 : index
    %c0_156 = arith.constant 0 : index
    %433 = vector.load %arg5[%432, %c0_155, %c0_156] : memref<8x8x32xf32, #tpu.memory_space<vmem>>, vector<1x8x32xf32>
    %434 = vector.shape_cast %433 : vector<1x8x32xf32> to vector<8x32xf32>
    %435 = vector.shape_cast %427 : vector<8x32xf32> to vector<1x8x32xf32>
    tpu.vector_store %arg5[%432, %c0_155, %c0_156], %435 {strides = array<i32>} : memref<8x8x32xf32, #tpu.memory_space<vmem>>, vector<1x8x32xf32>,
    %c5_i32 = arith.constant 5 : i32
    %c7_i32_157 = arith.constant 7 : i32
    %436 = arith.subi %c7_i32_157, %c5_i32 : i32
    %437 = arith.index_cast %c5_i32 : i32 to index
    %c0_158 = arith.constant 0 : index
    %c0_159 = arith.constant 0 : index
    %438 = vector.load %arg1[%437, %c0_158, %c0_159] : memref<8x8x128xbf16, #tpu.memory_space<vmem>>, vector<1x8x128xbf16>
    %439 = vector.shape_cast %438 : vector<1x8x128xbf16> to vector<8x128xbf16>
    %440 = arith.truncf %396 : vector<8x32xf32> to vector<8x32xbf16>
    %cst_160 = arith.constant dense<0.000000e+00> : vector<8x128xf32>
    %441 = tpu.matmul %440, %4, %cst_160 {dimension_numbers = #tpu.dot_dimension_numbers<[1], [0], [0], [1], [0, 0, 1, 1], [], []>} : vector<8x32xbf16>, vector<32x128xbf16>, vector<8x128xf32> -> vector<8x128xf32>
    %442 = arith.extf %439 : vector<8x128xbf16> to vector<8x128xf32>
    %443 = arith.addf %442, %441 : vector<8x128xf32>
    %444 = arith.index_cast %436 : i32 to index
    %c0_161 = arith.constant 0 : index
    %c0_162 = arith.constant 0 : index
    %445 = vector.load %arg2[%444, %c0_161, %c0_162] : memref<8x8x128xbf16, #tpu.memory_space<vmem>>, vector<1x8x128xbf16>
    %446 = vector.shape_cast %445 : vector<1x8x128xbf16> to vector<8x128xbf16>
    %447 = arith.truncf %427 : vector<8x32xf32> to vector<8x32xbf16>
    %cst_163 = arith.constant dense<0.000000e+00> : vector<8x128xf32>
    %448 = tpu.matmul %447, %6, %cst_163 {dimension_numbers = #tpu.dot_dimension_numbers<[1], [0], [0], [1], [0, 0, 1, 1], [], []>} : vector<8x32xbf16>, vector<32x128xbf16>, vector<8x128xf32> -> vector<8x128xf32>
    %449 = arith.extf %446 : vector<8x128xbf16> to vector<8x128xf32>
    %450 = arith.addf %449, %448 : vector<8x128xf32>
    %451 = vector.extract_strided_slice %443 {offsets = [0, 0], sizes = [8, 32], strides = [1, 1]} : vector<8x128xf32> to vector<8x32xf32>
    %cst_164 = arith.constant 5.000000e-01 : f32
    %452 = vector.broadcast %cst_164 : f32 to vector<8x32xf32>
    %453 = arith.mulf %452, %451 : vector<8x32xf32>
    %454 = math.tanh %453 : vector<8x32xf32>
    %cst_165 = arith.constant 5.000000e-01 : f32
    %455 = vector.broadcast %cst_165 : f32 to vector<8x32xf32>
    %456 = arith.mulf %455, %454 : vector<8x32xf32>
    %cst_166 = arith.constant 5.000000e-01 : f32
    %457 = vector.broadcast %cst_166 : f32 to vector<8x32xf32>
    %458 = arith.addf %456, %457 : vector<8x32xf32>
    %459 = vector.extract_strided_slice %443 {offsets = [0, 32], sizes = [8, 32], strides = [1, 1]} : vector<8x128xf32> to vector<8x32xf32>
    %cst_167 = arith.constant 5.000000e-01 : f32
    %460 = vector.broadcast %cst_167 : f32 to vector<8x32xf32>
    %461 = arith.mulf %460, %459 : vector<8x32xf32>
    %462 = math.tanh %461 : vector<8x32xf32>
    %cst_168 = arith.constant 5.000000e-01 : f32
    %463 = vector.broadcast %cst_168 : f32 to vector<8x32xf32>
    %464 = arith.mulf %463, %462 : vector<8x32xf32>
    %cst_169 = arith.constant 5.000000e-01 : f32
    %465 = vector.broadcast %cst_169 : f32 to vector<8x32xf32>
    %466 = arith.addf %464, %465 : vector<8x32xf32>
    %467 = vector.extract_strided_slice %443 {offsets = [0, 64], sizes = [8, 32], strides = [1, 1]} : vector<8x128xf32> to vector<8x32xf32>
    %468 = math.tanh %467 : vector<8x32xf32>
    %469 = vector.extract_strided_slice %443 {offsets = [0, 96], sizes = [8, 32], strides = [1, 1]} : vector<8x128xf32> to vector<8x32xf32>
    %cst_170 = arith.constant 5.000000e-01 : f32
    %470 = vector.broadcast %cst_170 : f32 to vector<8x32xf32>
    %471 = arith.mulf %470, %469 : vector<8x32xf32>
    %472 = math.tanh %471 : vector<8x32xf32>
    %cst_171 = arith.constant 5.000000e-01 : f32
    %473 = vector.broadcast %cst_171 : f32 to vector<8x32xf32>
    %474 = arith.mulf %473, %472 : vector<8x32xf32>
    %cst_172 = arith.constant 5.000000e-01 : f32
    %475 = vector.broadcast %cst_172 : f32 to vector<8x32xf32>
    %476 = arith.addf %474, %475 : vector<8x32xf32>
    %477 = arith.mulf %466, %394 : vector<8x32xf32>
    %478 = arith.mulf %458, %468 : vector<8x32xf32>
    %479 = arith.addf %477, %478 : vector<8x32xf32>
    %480 = math.tanh %479 : vector<8x32xf32>
    %481 = arith.mulf %476, %480 : vector<8x32xf32>
    %482 = vector.extract_strided_slice %450 {offsets = [0, 0], sizes = [8, 32], strides = [1, 1]} : vector<8x128xf32> to vector<8x32xf32>
    %cst_173 = arith.constant 5.000000e-01 : f32
    %483 = vector.broadcast %cst_173 : f32 to vector<8x32xf32>
    %484 = arith.mulf %483, %482 : vector<8x32xf32>
    %485 = math.tanh %484 : vector<8x32xf32>
    %cst_174 = arith.constant 5.000000e-01 : f32
    %486 = vector.broadcast %cst_174 : f32 to vector<8x32xf32>
    %487 = arith.mulf %486, %485 : vector<8x32xf32>
    %cst_175 = arith.constant 5.000000e-01 : f32
    %488 = vector.broadcast %cst_175 : f32 to vector<8x32xf32>
    %489 = arith.addf %487, %488 : vector<8x32xf32>
    %490 = vector.extract_strided_slice %450 {offsets = [0, 32], sizes = [8, 32], strides = [1, 1]} : vector<8x128xf32> to vector<8x32xf32>
    %cst_176 = arith.constant 5.000000e-01 : f32
    %491 = vector.broadcast %cst_176 : f32 to vector<8x32xf32>
    %492 = arith.mulf %491, %490 : vector<8x32xf32>
    %493 = math.tanh %492 : vector<8x32xf32>
    %cst_177 = arith.constant 5.000000e-01 : f32
    %494 = vector.broadcast %cst_177 : f32 to vector<8x32xf32>
    %495 = arith.mulf %494, %493 : vector<8x32xf32>
    %cst_178 = arith.constant 5.000000e-01 : f32
    %496 = vector.broadcast %cst_178 : f32 to vector<8x32xf32>
    %497 = arith.addf %495, %496 : vector<8x32xf32>
    %498 = vector.extract_strided_slice %450 {offsets = [0, 64], sizes = [8, 32], strides = [1, 1]} : vector<8x128xf32> to vector<8x32xf32>
    %499 = math.tanh %498 : vector<8x32xf32>
    %500 = vector.extract_strided_slice %450 {offsets = [0, 96], sizes = [8, 32], strides = [1, 1]} : vector<8x128xf32> to vector<8x32xf32>
    %cst_179 = arith.constant 5.000000e-01 : f32
    %501 = vector.broadcast %cst_179 : f32 to vector<8x32xf32>
    %502 = arith.mulf %501, %500 : vector<8x32xf32>
    %503 = math.tanh %502 : vector<8x32xf32>
    %cst_180 = arith.constant 5.000000e-01 : f32
    %504 = vector.broadcast %cst_180 : f32 to vector<8x32xf32>
    %505 = arith.mulf %504, %503 : vector<8x32xf32>
    %cst_181 = arith.constant 5.000000e-01 : f32
    %506 = vector.broadcast %cst_181 : f32 to vector<8x32xf32>
    %507 = arith.addf %505, %506 : vector<8x32xf32>
    %508 = arith.mulf %497, %425 : vector<8x32xf32>
    %509 = arith.mulf %489, %499 : vector<8x32xf32>
    %510 = arith.addf %508, %509 : vector<8x32xf32>
    %511 = math.tanh %510 : vector<8x32xf32>
    %512 = arith.mulf %507, %511 : vector<8x32xf32>
    %513 = arith.index_cast %c5_i32 : i32 to index
    %c0_182 = arith.constant 0 : index
    %c0_183 = arith.constant 0 : index
    %514 = vector.load %arg4[%513, %c0_182, %c0_183] : memref<8x8x32xf32, #tpu.memory_space<vmem>>, vector<1x8x32xf32>
    %515 = vector.shape_cast %514 : vector<1x8x32xf32> to vector<8x32xf32>
    %516 = vector.shape_cast %481 : vector<8x32xf32> to vector<1x8x32xf32>
    tpu.vector_store %arg4[%513, %c0_182, %c0_183], %516 {strides = array<i32>} : memref<8x8x32xf32, #tpu.memory_space<vmem>>, vector<1x8x32xf32>,
    %517 = arith.index_cast %436 : i32 to index
    %c0_184 = arith.constant 0 : index
    %c0_185 = arith.constant 0 : index
    %518 = vector.load %arg5[%517, %c0_184, %c0_185] : memref<8x8x32xf32, #tpu.memory_space<vmem>>, vector<1x8x32xf32>
    %519 = vector.shape_cast %518 : vector<1x8x32xf32> to vector<8x32xf32>
    %520 = vector.shape_cast %512 : vector<8x32xf32> to vector<1x8x32xf32>
    tpu.vector_store %arg5[%517, %c0_184, %c0_185], %520 {strides = array<i32>} : memref<8x8x32xf32, #tpu.memory_space<vmem>>, vector<1x8x32xf32>,
    %c6_i32 = arith.constant 6 : i32
    %c7_i32_186 = arith.constant 7 : i32
    %521 = arith.subi %c7_i32_186, %c6_i32 : i32
    %522 = arith.index_cast %c6_i32 : i32 to index
    %c0_187 = arith.constant 0 : index
    %c0_188 = arith.constant 0 : index
    %523 = vector.load %arg1[%522, %c0_187, %c0_188] : memref<8x8x128xbf16, #tpu.memory_space<vmem>>, vector<1x8x128xbf16>
    %524 = vector.shape_cast %523 : vector<1x8x128xbf16> to vector<8x128xbf16>
    %525 = arith.truncf %481 : vector<8x32xf32> to vector<8x32xbf16>
    %cst_189 = arith.constant dense<0.000000e+00> : vector<8x128xf32>
    %526 = tpu.matmul %525, %4, %cst_189 {dimension_numbers = #tpu.dot_dimension_numbers<[1], [0], [0], [1], [0, 0, 1, 1], [], []>} : vector<8x32xbf16>, vector<32x128xbf16>, vector<8x128xf32> -> vector<8x128xf32>
    %527 = arith.extf %524 : vector<8x128xbf16> to vector<8x128xf32>
    %528 = arith.addf %527, %526 : vector<8x128xf32>
    %529 = arith.index_cast %521 : i32 to index
    %c0_190 = arith.constant 0 : index
    %c0_191 = arith.constant 0 : index
    %530 = vector.load %arg2[%529, %c0_190, %c0_191] : memref<8x8x128xbf16, #tpu.memory_space<vmem>>, vector<1x8x128xbf16>
    %531 = vector.shape_cast %530 : vector<1x8x128xbf16> to vector<8x128xbf16>
    %532 = arith.truncf %512 : vector<8x32xf32> to vector<8x32xbf16>
    %cst_192 = arith.constant dense<0.000000e+00> : vector<8x128xf32>
    %533 = tpu.matmul %532, %6, %cst_192 {dimension_numbers = #tpu.dot_dimension_numbers<[1], [0], [0], [1], [0, 0, 1, 1], [], []>} : vector<8x32xbf16>, vector<32x128xbf16>, vector<8x128xf32> -> vector<8x128xf32>
    %534 = arith.extf %531 : vector<8x128xbf16> to vector<8x128xf32>
    %535 = arith.addf %534, %533 : vector<8x128xf32>
    %536 = vector.extract_strided_slice %528 {offsets = [0, 0], sizes = [8, 32], strides = [1, 1]} : vector<8x128xf32> to vector<8x32xf32>
    %cst_193 = arith.constant 5.000000e-01 : f32
    %537 = vector.broadcast %cst_193 : f32 to vector<8x32xf32>
    %538 = arith.mulf %537, %536 : vector<8x32xf32>
    %539 = math.tanh %538 : vector<8x32xf32>
    %cst_194 = arith.constant 5.000000e-01 : f32
    %540 = vector.broadcast %cst_194 : f32 to vector<8x32xf32>
    %541 = arith.mulf %540, %539 : vector<8x32xf32>
    %cst_195 = arith.constant 5.000000e-01 : f32
    %542 = vector.broadcast %cst_195 : f32 to vector<8x32xf32>
    %543 = arith.addf %541, %542 : vector<8x32xf32>
    %544 = vector.extract_strided_slice %528 {offsets = [0, 32], sizes = [8, 32], strides = [1, 1]} : vector<8x128xf32> to vector<8x32xf32>
    %cst_196 = arith.constant 5.000000e-01 : f32
    %545 = vector.broadcast %cst_196 : f32 to vector<8x32xf32>
    %546 = arith.mulf %545, %544 : vector<8x32xf32>
    %547 = math.tanh %546 : vector<8x32xf32>
    %cst_197 = arith.constant 5.000000e-01 : f32
    %548 = vector.broadcast %cst_197 : f32 to vector<8x32xf32>
    %549 = arith.mulf %548, %547 : vector<8x32xf32>
    %cst_198 = arith.constant 5.000000e-01 : f32
    %550 = vector.broadcast %cst_198 : f32 to vector<8x32xf32>
    %551 = arith.addf %549, %550 : vector<8x32xf32>
    %552 = vector.extract_strided_slice %528 {offsets = [0, 64], sizes = [8, 32], strides = [1, 1]} : vector<8x128xf32> to vector<8x32xf32>
    %553 = math.tanh %552 : vector<8x32xf32>
    %554 = vector.extract_strided_slice %528 {offsets = [0, 96], sizes = [8, 32], strides = [1, 1]} : vector<8x128xf32> to vector<8x32xf32>
    %cst_199 = arith.constant 5.000000e-01 : f32
    %555 = vector.broadcast %cst_199 : f32 to vector<8x32xf32>
    %556 = arith.mulf %555, %554 : vector<8x32xf32>
    %557 = math.tanh %556 : vector<8x32xf32>
    %cst_200 = arith.constant 5.000000e-01 : f32
    %558 = vector.broadcast %cst_200 : f32 to vector<8x32xf32>
    %559 = arith.mulf %558, %557 : vector<8x32xf32>
    %cst_201 = arith.constant 5.000000e-01 : f32
    %560 = vector.broadcast %cst_201 : f32 to vector<8x32xf32>
    %561 = arith.addf %559, %560 : vector<8x32xf32>
    %562 = arith.mulf %551, %479 : vector<8x32xf32>
    %563 = arith.mulf %543, %553 : vector<8x32xf32>
    %564 = arith.addf %562, %563 : vector<8x32xf32>
    %565 = math.tanh %564 : vector<8x32xf32>
    %566 = arith.mulf %561, %565 : vector<8x32xf32>
    %567 = vector.extract_strided_slice %535 {offsets = [0, 0], sizes = [8, 32], strides = [1, 1]} : vector<8x128xf32> to vector<8x32xf32>
    %cst_202 = arith.constant 5.000000e-01 : f32
    %568 = vector.broadcast %cst_202 : f32 to vector<8x32xf32>
    %569 = arith.mulf %568, %567 : vector<8x32xf32>
    %570 = math.tanh %569 : vector<8x32xf32>
    %cst_203 = arith.constant 5.000000e-01 : f32
    %571 = vector.broadcast %cst_203 : f32 to vector<8x32xf32>
    %572 = arith.mulf %571, %570 : vector<8x32xf32>
    %cst_204 = arith.constant 5.000000e-01 : f32
    %573 = vector.broadcast %cst_204 : f32 to vector<8x32xf32>
    %574 = arith.addf %572, %573 : vector<8x32xf32>
    %575 = vector.extract_strided_slice %535 {offsets = [0, 32], sizes = [8, 32], strides = [1, 1]} : vector<8x128xf32> to vector<8x32xf32>
    %cst_205 = arith.constant 5.000000e-01 : f32
    %576 = vector.broadcast %cst_205 : f32 to vector<8x32xf32>
    %577 = arith.mulf %576, %575 : vector<8x32xf32>
    %578 = math.tanh %577 : vector<8x32xf32>
    %cst_206 = arith.constant 5.000000e-01 : f32
    %579 = vector.broadcast %cst_206 : f32 to vector<8x32xf32>
    %580 = arith.mulf %579, %578 : vector<8x32xf32>
    %cst_207 = arith.constant 5.000000e-01 : f32
    %581 = vector.broadcast %cst_207 : f32 to vector<8x32xf32>
    %582 = arith.addf %580, %581 : vector<8x32xf32>
    %583 = vector.extract_strided_slice %535 {offsets = [0, 64], sizes = [8, 32], strides = [1, 1]} : vector<8x128xf32> to vector<8x32xf32>
    %584 = math.tanh %583 : vector<8x32xf32>
    %585 = vector.extract_strided_slice %535 {offsets = [0, 96], sizes = [8, 32], strides = [1, 1]} : vector<8x128xf32> to vector<8x32xf32>
    %cst_208 = arith.constant 5.000000e-01 : f32
    %586 = vector.broadcast %cst_208 : f32 to vector<8x32xf32>
    %587 = arith.mulf %586, %585 : vector<8x32xf32>
    %588 = math.tanh %587 : vector<8x32xf32>
    %cst_209 = arith.constant 5.000000e-01 : f32
    %589 = vector.broadcast %cst_209 : f32 to vector<8x32xf32>
    %590 = arith.mulf %589, %588 : vector<8x32xf32>
    %cst_210 = arith.constant 5.000000e-01 : f32
    %591 = vector.broadcast %cst_210 : f32 to vector<8x32xf32>
    %592 = arith.addf %590, %591 : vector<8x32xf32>
    %593 = arith.mulf %582, %510 : vector<8x32xf32>
    %594 = arith.mulf %574, %584 : vector<8x32xf32>
    %595 = arith.addf %593, %594 : vector<8x32xf32>
    %596 = math.tanh %595 : vector<8x32xf32>
    %597 = arith.mulf %592, %596 : vector<8x32xf32>
    %598 = arith.index_cast %c6_i32 : i32 to index
    %c0_211 = arith.constant 0 : index
    %c0_212 = arith.constant 0 : index
    %599 = vector.load %arg4[%598, %c0_211, %c0_212] : memref<8x8x32xf32, #tpu.memory_space<vmem>>, vector<1x8x32xf32>
    %600 = vector.shape_cast %599 : vector<1x8x32xf32> to vector<8x32xf32>
    %601 = vector.shape_cast %566 : vector<8x32xf32> to vector<1x8x32xf32>
    tpu.vector_store %arg4[%598, %c0_211, %c0_212], %601 {strides = array<i32>} : memref<8x8x32xf32, #tpu.memory_space<vmem>>, vector<1x8x32xf32>,
    %602 = arith.index_cast %521 : i32 to index
    %c0_213 = arith.constant 0 : index
    %c0_214 = arith.constant 0 : index
    %603 = vector.load %arg5[%602, %c0_213, %c0_214] : memref<8x8x32xf32, #tpu.memory_space<vmem>>, vector<1x8x32xf32>
    %604 = vector.shape_cast %603 : vector<1x8x32xf32> to vector<8x32xf32>
    %605 = vector.shape_cast %597 : vector<8x32xf32> to vector<1x8x32xf32>
    tpu.vector_store %arg5[%602, %c0_213, %c0_214], %605 {strides = array<i32>} : memref<8x8x32xf32, #tpu.memory_space<vmem>>, vector<1x8x32xf32>,
    %c7_i32_215 = arith.constant 7 : i32
    %c7_i32_216 = arith.constant 7 : i32
    %606 = arith.subi %c7_i32_216, %c7_i32_215 : i32
    %607 = arith.index_cast %c7_i32_215 : i32 to index
    %c0_217 = arith.constant 0 : index
    %c0_218 = arith.constant 0 : index
    %608 = vector.load %arg1[%607, %c0_217, %c0_218] : memref<8x8x128xbf16, #tpu.memory_space<vmem>>, vector<1x8x128xbf16>
    %609 = vector.shape_cast %608 : vector<1x8x128xbf16> to vector<8x128xbf16>
    %610 = arith.truncf %566 : vector<8x32xf32> to vector<8x32xbf16>
    %cst_219 = arith.constant dense<0.000000e+00> : vector<8x128xf32>
    %611 = tpu.matmul %610, %4, %cst_219 {dimension_numbers = #tpu.dot_dimension_numbers<[1], [0], [0], [1], [0, 0, 1, 1], [], []>} : vector<8x32xbf16>, vector<32x128xbf16>, vector<8x128xf32> -> vector<8x128xf32>
    %612 = arith.extf %609 : vector<8x128xbf16> to vector<8x128xf32>
    %613 = arith.addf %612, %611 : vector<8x128xf32>
    %614 = arith.index_cast %606 : i32 to index
    %c0_220 = arith.constant 0 : index
    %c0_221 = arith.constant 0 : index
    %615 = vector.load %arg2[%614, %c0_220, %c0_221] : memref<8x8x128xbf16, #tpu.memory_space<vmem>>, vector<1x8x128xbf16>
    %616 = vector.shape_cast %615 : vector<1x8x128xbf16> to vector<8x128xbf16>
    %617 = arith.truncf %597 : vector<8x32xf32> to vector<8x32xbf16>
    %cst_222 = arith.constant dense<0.000000e+00> : vector<8x128xf32>
    %618 = tpu.matmul %617, %6, %cst_222 {dimension_numbers = #tpu.dot_dimension_numbers<[1], [0], [0], [1], [0, 0, 1, 1], [], []>} : vector<8x32xbf16>, vector<32x128xbf16>, vector<8x128xf32> -> vector<8x128xf32>
    %619 = arith.extf %616 : vector<8x128xbf16> to vector<8x128xf32>
    %620 = arith.addf %619, %618 : vector<8x128xf32>
    %621 = vector.extract_strided_slice %613 {offsets = [0, 0], sizes = [8, 32], strides = [1, 1]} : vector<8x128xf32> to vector<8x32xf32>
    %cst_223 = arith.constant 5.000000e-01 : f32
    %622 = vector.broadcast %cst_223 : f32 to vector<8x32xf32>
    %623 = arith.mulf %622, %621 : vector<8x32xf32>
    %624 = math.tanh %623 : vector<8x32xf32>
    %cst_224 = arith.constant 5.000000e-01 : f32
    %625 = vector.broadcast %cst_224 : f32 to vector<8x32xf32>
    %626 = arith.mulf %625, %624 : vector<8x32xf32>
    %cst_225 = arith.constant 5.000000e-01 : f32
    %627 = vector.broadcast %cst_225 : f32 to vector<8x32xf32>
    %628 = arith.addf %626, %627 : vector<8x32xf32>
    %629 = vector.extract_strided_slice %613 {offsets = [0, 32], sizes = [8, 32], strides = [1, 1]} : vector<8x128xf32> to vector<8x32xf32>
    %cst_226 = arith.constant 5.000000e-01 : f32
    %630 = vector.broadcast %cst_226 : f32 to vector<8x32xf32>
    %631 = arith.mulf %630, %629 : vector<8x32xf32>
    %632 = math.tanh %631 : vector<8x32xf32>
    %cst_227 = arith.constant 5.000000e-01 : f32
    %633 = vector.broadcast %cst_227 : f32 to vector<8x32xf32>
    %634 = arith.mulf %633, %632 : vector<8x32xf32>
    %cst_228 = arith.constant 5.000000e-01 : f32
    %635 = vector.broadcast %cst_228 : f32 to vector<8x32xf32>
    %636 = arith.addf %634, %635 : vector<8x32xf32>
    %637 = vector.extract_strided_slice %613 {offsets = [0, 64], sizes = [8, 32], strides = [1, 1]} : vector<8x128xf32> to vector<8x32xf32>
    %638 = math.tanh %637 : vector<8x32xf32>
    %639 = vector.extract_strided_slice %613 {offsets = [0, 96], sizes = [8, 32], strides = [1, 1]} : vector<8x128xf32> to vector<8x32xf32>
    %cst_229 = arith.constant 5.000000e-01 : f32
    %640 = vector.broadcast %cst_229 : f32 to vector<8x32xf32>
    %641 = arith.mulf %640, %639 : vector<8x32xf32>
    %642 = math.tanh %641 : vector<8x32xf32>
    %cst_230 = arith.constant 5.000000e-01 : f32
    %643 = vector.broadcast %cst_230 : f32 to vector<8x32xf32>
    %644 = arith.mulf %643, %642 : vector<8x32xf32>
    %cst_231 = arith.constant 5.000000e-01 : f32
    %645 = vector.broadcast %cst_231 : f32 to vector<8x32xf32>
    %646 = arith.addf %644, %645 : vector<8x32xf32>
    %647 = arith.mulf %636, %564 : vector<8x32xf32>
    %648 = arith.mulf %628, %638 : vector<8x32xf32>
    %649 = arith.addf %647, %648 : vector<8x32xf32>
    %650 = math.tanh %649 : vector<8x32xf32>
    %651 = arith.mulf %646, %650 : vector<8x32xf32>
    %652 = vector.extract_strided_slice %620 {offsets = [0, 0], sizes = [8, 32], strides = [1, 1]} : vector<8x128xf32> to vector<8x32xf32>
    %cst_232 = arith.constant 5.000000e-01 : f32
    %653 = vector.broadcast %cst_232 : f32 to vector<8x32xf32>
    %654 = arith.mulf %653, %652 : vector<8x32xf32>
    %655 = math.tanh %654 : vector<8x32xf32>
    %cst_233 = arith.constant 5.000000e-01 : f32
    %656 = vector.broadcast %cst_233 : f32 to vector<8x32xf32>
    %657 = arith.mulf %656, %655 : vector<8x32xf32>
    %cst_234 = arith.constant 5.000000e-01 : f32
    %658 = vector.broadcast %cst_234 : f32 to vector<8x32xf32>
    %659 = arith.addf %657, %658 : vector<8x32xf32>
    %660 = vector.extract_strided_slice %620 {offsets = [0, 32], sizes = [8, 32], strides = [1, 1]} : vector<8x128xf32> to vector<8x32xf32>
    %cst_235 = arith.constant 5.000000e-01 : f32
    %661 = vector.broadcast %cst_235 : f32 to vector<8x32xf32>
    %662 = arith.mulf %661, %660 : vector<8x32xf32>
    %663 = math.tanh %662 : vector<8x32xf32>
    %cst_236 = arith.constant 5.000000e-01 : f32
    %664 = vector.broadcast %cst_236 : f32 to vector<8x32xf32>
    %665 = arith.mulf %664, %663 : vector<8x32xf32>
    %cst_237 = arith.constant 5.000000e-01 : f32
    %666 = vector.broadcast %cst_237 : f32 to vector<8x32xf32>
    %667 = arith.addf %665, %666 : vector<8x32xf32>
    %668 = vector.extract_strided_slice %620 {offsets = [0, 64], sizes = [8, 32], strides = [1, 1]} : vector<8x128xf32> to vector<8x32xf32>
    %669 = math.tanh %668 : vector<8x32xf32>
    %670 = vector.extract_strided_slice %620 {offsets = [0, 96], sizes = [8, 32], strides = [1, 1]} : vector<8x128xf32> to vector<8x32xf32>
    %cst_238 = arith.constant 5.000000e-01 : f32
    %671 = vector.broadcast %cst_238 : f32 to vector<8x32xf32>
    %672 = arith.mulf %671, %670 : vector<8x32xf32>
    %673 = math.tanh %672 : vector<8x32xf32>
    %cst_239 = arith.constant 5.000000e-01 : f32
    %674 = vector.broadcast %cst_239 : f32 to vector<8x32xf32>
    %675 = arith.mulf %674, %673 : vector<8x32xf32>
    %cst_240 = arith.constant 5.000000e-01 : f32
    %676 = vector.broadcast %cst_240 : f32 to vector<8x32xf32>
    %677 = arith.addf %675, %676 : vector<8x32xf32>
    %678 = arith.mulf %667, %595 : vector<8x32xf32>
    %679 = arith.mulf %659, %669 : vector<8x32xf32>
    %680 = arith.addf %678, %679 : vector<8x32xf32>
    %681 = math.tanh %680 : vector<8x32xf32>
    %682 = arith.mulf %677, %681 : vector<8x32xf32>
    %683 = arith.index_cast %c7_i32_215 : i32 to index
    %c0_241 = arith.constant 0 : index
    %c0_242 = arith.constant 0 : index
    %684 = vector.load %arg4[%683, %c0_241, %c0_242] : memref<8x8x32xf32, #tpu.memory_space<vmem>>, vector<1x8x32xf32>
    %685 = vector.shape_cast %684 : vector<1x8x32xf32> to vector<8x32xf32>
    %686 = vector.shape_cast %651 : vector<8x32xf32> to vector<1x8x32xf32>
    tpu.vector_store %arg4[%683, %c0_241, %c0_242], %686 {strides = array<i32>} : memref<8x8x32xf32, #tpu.memory_space<vmem>>, vector<1x8x32xf32>,
    %687 = arith.index_cast %606 : i32 to index
    %c0_243 = arith.constant 0 : index
    %c0_244 = arith.constant 0 : index
    %688 = vector.load %arg5[%687, %c0_243, %c0_244] : memref<8x8x32xf32, #tpu.memory_space<vmem>>, vector<1x8x32xf32>
    %689 = vector.shape_cast %688 : vector<1x8x32xf32> to vector<8x32xf32>
    %690 = vector.shape_cast %682 : vector<8x32xf32> to vector<1x8x32xf32>
    tpu.vector_store %arg5[%687, %c0_243, %c0_244], %690 {strides = array<i32>} : memref<8x8x32xf32, #tpu.memory_space<vmem>>, vector<1x8x32xf32>,
    %c8_i32 = arith.constant 8 : i32
    %c0_245 = arith.constant 0 : index
    %c0_246 = arith.constant 0 : index
    %691 = vector.load %arg6[%c0_245, %c0_246] : memref<8x32xf32, #tpu.memory_space<vmem>>, vector<8x32xf32>
    tpu.vector_store %arg6[%c0_245, %c0_246], %651 {strides = array<i32>} : memref<8x32xf32, #tpu.memory_space<vmem>>, vector<8x32xf32>,
    %c0_247 = arith.constant 0 : index
    %c0_248 = arith.constant 0 : index
    %692 = vector.load %arg7[%c0_247, %c0_248] : memref<8x32xf32, #tpu.memory_space<vmem>>, vector<8x32xf32>
    tpu.vector_store %arg7[%c0_247, %c0_248], %649 {strides = array<i32>} : memref<8x32xf32, #tpu.memory_space<vmem>>, vector<8x32xf32>,
    %c0_249 = arith.constant 0 : index
    %c0_250 = arith.constant 0 : index
    %693 = vector.load %arg8[%c0_249, %c0_250] : memref<8x32xf32, #tpu.memory_space<vmem>>, vector<8x32xf32>
    tpu.vector_store %arg8[%c0_249, %c0_250], %682 {strides = array<i32>} : memref<8x32xf32, #tpu.memory_space<vmem>>, vector<8x32xf32>,
    %c0_251 = arith.constant 0 : index
    %c0_252 = arith.constant 0 : index
    %694 = vector.load %arg9[%c0_251, %c0_252] : memref<8x32xf32, #tpu.memory_space<vmem>>, vector<8x32xf32>
    tpu.vector_store %arg9[%c0_251, %c0_252], %680 {strides = array<i32>} : memref<8x32xf32, #tpu.memory_space<vmem>>, vector<8x32xf32>,
    return
  }
  func.func @transform_0(%arg0: i32) -> (i32, i32, i32) {
    %c0_i32 = arith.constant 0 : i32
    %c0_i32_0 = arith.constant 0 : i32
    %c0_i32_1 = arith.constant 0 : i32
    return %arg0, %c0_i32, %c0_i32_0 : i32, i32, i32
  }
  func.func @transform_1(%arg0: i32) -> (i32, i32, i32) {
    %c0_i32 = arith.constant 0 : i32
    %0 = arith.subi %c0_i32, %arg0 : i32
    %c0_i32_0 = arith.constant 0 : i32
    %c0_i32_1 = arith.constant 0 : i32
    %c0_i32_2 = arith.constant 0 : i32
    return %0, %c0_i32_0, %c0_i32_1 : i32, i32, i32
  }
  func.func @transform_2(%arg0: i32) -> (i32, i32, i32) {
    %c0_i32 = arith.constant 0 : i32
    %c0_i32_0 = arith.constant 0 : i32
    %c0_i32_1 = arith.constant 0 : i32
    %c0_i32_2 = arith.constant 0 : i32
    return %c0_i32, %c0_i32_0, %c0_i32_1 : i32, i32, i32
  }
  func.func @transform_3(%arg0: i32) -> (i32, i32, i32) {
    %c0_i32 = arith.constant 0 : i32
    %c0_i32_0 = arith.constant 0 : i32
    %c0_i32_1 = arith.constant 0 : i32
    return %arg0, %c0_i32, %c0_i32_0 : i32, i32, i32
  }
  func.func @transform_4(%arg0: i32) -> (i32, i32, i32) {
    %c0_i32 = arith.constant 0 : i32
    %0 = arith.subi %c0_i32, %arg0 : i32
    %c0_i32_0 = arith.constant 0 : i32
    %c0_i32_1 = arith.constant 0 : i32
    %c0_i32_2 = arith.constant 0 : i32
    return %0, %c0_i32_0, %c0_i32_1 : i32, i32, i32
  }
}

</mosaic_0001>

<bundles_post_ra>
// kernel: tpu_custom_call.1
= control target key start
LH: loop header
LB: loop body
LE: loop exit
PB: predicated region body
PF: predicated region fallthrough
CT: control target
= control target key end

     0   :  { %10 = vsyncpa [#allocation7], 0  ;;  %s2350_s0 = inlined_call_operand.hbm [shape: bf16[8,8,128], index: 0, kind: input, shape index: {}]   ;;  %s2351_s1 = inlined_call_operand.hbm [shape: bf16[8,8,128], index: 1, kind: input, shape index: {}]   ;;  %s2352_s2 = inlined_call_operand.hbm [shape: bf16[2,32,128], index: 2, kind: input, shape index: {}]   ;;  %s2353_s3 = inlined_call_operand.hbm [shape: f32[8,8,32], index: 3, kind: output, shape index: {0}]   ;;  %s2354_s4 = inlined_call_operand.hbm [shape: f32[8,8,32], index: 4, kind: output, shape index: {1}]  }
   0x1   :  { %11 = vsyncpa [#allocation10], 0 }
   0x2   :  { %12 = vsyncpa [#allocation8], 0 }
   0x3   :  { %13 = vsyncpa [#allocation14], 0  ;;  %s1858_s15 = smov [#allocation9]   ;;  %s1859_s17 = smov [#allocation6]  }
   0x4   :  { %s35_s16 = sshll.u32 %s1858_s15, 4  ;;  %s19_s18 = sshll.u32 %s1859_s17, 4  ;;  %s36_s16 = int_to_ptr.vmem [resolvable:$true] %s35_s16  ;;  %s1896_s18 = int_to_ptr.vmem [resolvable:$true] %s19_s18 }
   0x5   :  { %s1740_s21 = scalar_lea.hbm %s2351_s1, 512 }
   0x6   :  { %p1741_p0 = scmp.ne.s32.totalorder %s2351_s1, %s1740_s21  ;;  %p1744_p1 = scmp.lt.u32.totalorder %s1740_s21, %s2351_s1 }
   0x8   :  { %p1746_p2 = pnand %p1744_p1, %p1741_p0 }
   0xa   :  { %1749 = shalt.err (!%p1746_p2)
}
   0xb   :  { %s1750_s26 = scalar_lea.vmem %s36_s16, 512  ;;  %p1755_p4 = scmp.lt.s32.totalorder %s36_s16, %s36_s16 }
   0xc   :  { %p1751_p3 = scmp.ne.s32.totalorder %s36_s16, %s1750_s26  ;;  %p1756_p5 = scmp.lt.s32.totalorder %s1750_s26, %s1750_s26 }
   0xe   :  { %p1757_p6 = por %p1756_p5, %p1755_p4 }
  0x10   :  { %p1758_p7 = pnand %p1757_p6, %p1751_p3 }
  0x12   :  { %1761 = shalt.err (!%p1758_p7)
}
  0x13   :  { %s1860_s27 = smov 64   ;;  %s1861_s28 = smov 4  }
  0x14   :  { %41 = dma.hbm_to_vmem [thread:$0]  %s2351_s1, 512, %s36_s16, [#allocation10], %s1860_s27, %s1860_s27, %s1861_s28  }
  0x15   :  { %s1762_s7 = scalar_lea.hbm %s2350_s0, 512 }
  0x16   :  { %p1763_p8 = scmp.ne.s32.totalorder %s2350_s0, %s1762_s7  ;;  %p1766_p9 = scmp.lt.u32.totalorder %s1762_s7, %s2350_s0 }
  0x18   :  { %p1768_p10 = pnand %p1766_p9, %p1763_p8 }
  0x1a   :  { %1771 = shalt.err (!%p1768_p10)
}
  0x1b   :  { %s1772_s12 = scalar_lea.vmem %s1896_s18, 512  ;;  %p1777_p12 = scmp.lt.s32.totalorder %s1896_s18, %s1896_s18 }
  0x1c   :  { %p1773_p11 = scmp.ne.s32.totalorder %s1896_s18, %s1772_s12  ;;  %p1778_p13 = scmp.lt.s32.totalorder %s1772_s12, %s1772_s12 }
  0x1e   :  { %p1779_p0 = por %p1778_p13, %p1777_p12 }
  0x20   :  { %p1780_p1 = pnand %p1779_p0, %p1773_p11 }
  0x22   :  { %1783 = shalt.err (!%p1780_p1)
}
  0x23   :  { %25 = dma.hbm_to_vmem [thread:$0]  %s2350_s0, 512, %s1896_s18, [#allocation7], %s1860_s27, %s1860_s27, %s1861_s28  }
  0x24   :  { %s1862_s14 = smov [#allocation11]   ;;  %s1784_s19 = scalar_lea.hbm %s2352_s2, 512 }
  0x25   :  { %s47_s15 = sshll.u32 %s1862_s14, 4  ;;  %p1785_p2 = scmp.ne.s32.totalorder %s2352_s2, %s1784_s19  ;;  %s48_s15 = int_to_ptr.vmem [resolvable:$true] %s47_s15 }
  0x26   :  { %p1788_p3 = scmp.lt.u32.totalorder %s1784_s19, %s2352_s2 }
  0x28   :  { %p1790_p4 = pnand %p1788_p3, %p1785_p2 }
  0x2a   :  { %1793 = shalt.err (!%p1790_p4)
}
  0x2b   :  { %s1794_s24 = scalar_lea.vmem %s48_s15, 512  ;;  %p1799_p6 = scmp.lt.s32.totalorder %s48_s15, %s48_s15 }
  0x2c   :  { %p1795_p5 = scmp.ne.s32.totalorder %s48_s15, %s1794_s24  ;;  %p1800_p7 = scmp.lt.s32.totalorder %s1794_s24, %s1794_s24 }
  0x2e   :  { %p1801_p8 = por %p1800_p7, %p1799_p6 }
  0x30   :  { %p1802_p9 = pnand %p1801_p8, %p1795_p5 }
  0x32   :  { %1805 = shalt.err (!%p1802_p9)
}
  0x33   :  { %53 = dma.hbm_to_vmem [thread:$0]  %s2352_s2, 512, %s48_s15, [#allocation10], %s1860_s27, %s1860_s27, %s1861_s28  }
  0x34   :  { %1850 = dma.done.wait [#allocation7], 512  }
  0x35   :  { %1851 = vsyncadd [#allocation7], 4294966784 }
  0x36   :  { %1852 = dma.done.wait [#allocation10], 1024  }
  0x37   :  { %1853 = vsyncadd [#allocation10], 4294966272  ;;  %vm72_vm0 = vcmask 261120   ;;  %v1863_v0 = vmov 0.0   ;;  %vm1864_vm1 = vmmov 0   ;;  %v1962_v1 = vld [vmem:[#allocation11] sm:$0xff]  }
  0x38   :  { %1499 = vmatprep.subr.bf16.mxu0 %v1863_v0  ;;  %1507 = vmatprep.subr.bf16.mxu1 %v1863_v0  ;;  %73 = vst.msk [vmem:[#allocation2] sm:$0xff] %vm72_vm0, %v1863_v0  ;;  %74 = vst.msk [vmem:[#allocation3] sm:$0xff] %vm72_vm0, %v1863_v0  ;;  %v1964_v2 = vld [vmem:[#allocation11 + $0x10] sm:$0xff]   ;;  %v1967_v3 = vld [vmem:[#allocation11 + $0x8] sm:$0xff]   ;;  %s1865_s2 = smov 32   ;;  %s1866_s25 = smov 96  }
  0x39   :  { %75 = vst.msk [vmem:[#allocation4] sm:$0xff] %vm72_vm0, %v1863_v0  ;;  %76 = vst.msk [vmem:[#allocation5] sm:$0xff] %vm72_vm0, %v1863_v0  ;;  %1503 = vmatprep.mubr.msk.bf16.mxu0 %vm1864_vm1, %v1863_v0  ;;  %1511 = vmatprep.mubr.msk.bf16.mxu1 %vm1864_vm1, %v1863_v0  ;;  %v1971_v4 = vld [vmem:[#allocation11 + $0x18] sm:$0xff]   ;;  %v1994_v11 = vld [vmem:[#allocation6] sm:$0xff]   ;;  %s1867_s26 = smov [#allocation12]   ;;  %s1868_s28 = smov [#allocation13]  }
  0x3a   :  { %1500 = vmatpush3.bf16.msra.mxu0 %v1962_v1  ;;  %1508 = vmatpush3.bf16.msra.mxu1 %v1964_v2  ;;  %v1996_v12 = vld [vmem:[#allocation9 + $0x18] sm:$0xff]   ;;  %v148_v13 = vunpack.c.l.bf16 %v1994_v11  ;;  %v322_v57 = vunpack.c.h.bf16 %v1994_v11  ;;  %s1410_s29 = sshll.u32 %s1868_s28, 4  ;;  %s1411_s29 = int_to_ptr.vmem [resolvable:$true] %s1410_s29 }
  0x3b   :  { %1501 = vmatprep.subr.bf16.mxu0 %v1863_v0  ;;  %1509 = vmatprep.subr.bf16.mxu1 %v1863_v0  ;;  %v208_v14 = vunpack.c.h.bf16 %v1996_v12  ;;  %v373_v61 = vunpack.c.l.bf16 %v1996_v12 }
  0x3e   :  { %1502 = vmatpush3.bf16.msra.mxu0 %v1967_v3  ;;  %1510 = vmatpush3.bf16.msra.mxu1 %v1971_v4 }
  0x3f   :  { %v86_v5 = vld [vmem:[#allocation2] sm:$0xff]  ;;  %v87_v7 = vld [vmem:[#allocation3] sm:$0xff]  ;;  %1515 = vmatprep.subr.bf16.mxu0 %v1863_v0  ;;  %1523 = vmatprep.subr.bf16.mxu1 %v1863_v0 }
  0x40   :  { %v88_v6 = vld [vmem:[#allocation4] sm:$0xff]  ;;  %v91_v8 = vpack.c.bf16 %v86_v5, %v86_v5  ;;  %216 = vrot.lane.b32.xlu1 %v87_v7, %s1865_s2  ;;  %v89_v10 = vld [vmem:[#allocation5] sm:$0xff] }
  0x41   :  { %v152_v9 = vpack.c.bf16 %v88_v6, %v88_v6 }
  0x42   :  { %1504 = vmatmul.mubr.msk.bf16.vlgmr.msra.gmra.mrb[0].mxu0 %vm72_vm0, %v91_v8 }
  0x43   :  { %1512 = vmatmul.mubr.msk.bf16.vlgmr.msra.gmra.mrb[0].mxu1 %vm72_vm0, %v152_v9  ;;  %1516 = vmatpush3.bf16.msra.mxu0 %v1962_v1 }
  0x44   :  { %242 = vrot.lane.b32.xlu1 %v89_v10, %s1865_s2  ;;  %1517 = vmatprep.subr.bf16.mxu0 %v1863_v0 }
  0x45   :  { %1524 = vmatpush3.bf16.msra.mxu1 %v1964_v2  ;;  %1519 = vmatprep.mubr.msk.bf16.mxu0 %vm1864_vm1, %v1863_v0 }
  0x46   :  { %1525 = vmatprep.subr.bf16.mxu1 %v1863_v0  ;;  %1527 = vmatprep.mubr.msk.bf16.mxu1 %vm1864_vm1, %v1863_v0 }
  0x47   :  { %1518 = vmatpush3.bf16.msra.mxu0 %v1967_v3 }
  0x48   :  { %1531 = vmatprep.subr.bf16.mxu0 %v1863_v0 }
  0x49   :  { %1526 = vmatpush3.bf16.msra.mxu1 %v1971_v4 }
  0x4a   :  { %1539 = vmatprep.subr.bf16.mxu1 %v1863_v0 }
  0xb2   :  { %v217_v39 = vpop.permute.xlu1 %216 }
  0xb6   :  { %v243_v41 = vpop.permute.xlu1 %242 }
 0x115   :  { %v142_v15 = vpop.f32.mrb[0].mxu0 }
 0x116   :  { %v149_v16 = vadd.f32 %v148_v13, %v142_v15  ;;  %v1505_v17 = vpop.f32.mrb[1].mxu0  ;;  %v202_v18 = vpop.f32.mrb[0].mxu1 }
 0x117   :  { %v209_v19 = vadd.f32 %v208_v14, %v202_v18  ;;  %v145_v20 = vpop.f32.mrb[2].mxu0  ;;  %v1513_v21 = vpop.f32.mrb[1].mxu1 }
 0x118   :  { %v1506_v22 = vpop.f32.mrb[3].mxu0  ;;  %v205_v23 = vpop.f32.mrb[2].mxu1  ;;  %1644 = vtanh.f32 %v149_v16  ;;  %v210_v27 = vmul.f32 0.5, %v149_v16 }
 0x119   :  { %v1514_v24 = vpop.f32.mrb[3].mxu1  ;;  %1646 = vtanh.f32 %v209_v19  ;;  %v236_v28 = vmul.f32 0.5, %v209_v19 }
 0x11a   :  { %1648 = vtanh.f32 %v210_v27 }
 0x11b   :  { %1650 = vtanh.f32 %v236_v28 }
 0x122   :  { %v1645_v25 = vpop.eup %1644 }
 0x123   :  { %221 = vrot.lane.b32.xlu0 %v1645_v25, %s1860_s27  ;;  %v1647_v26 = vpop.eup %1646 }
 0x124   :  { %v1649_v29 = vpop.eup %1648 }
 0x125   :  { %v212_v30 = vmul.f32 0.5, %v1649_v29  ;;  %v1651_v31 = vpop.eup %1650 }
 0x126   :  { %v238_v33 = vmul.f32 0.5, %v1651_v31 }
 0x127   :  { %247 = vrot.lane.b32.xlu0 %v1647_v26, %s1860_s27  ;;  %v213_v32 = vadd.f32 0.5, %v212_v30 }
 0x128   :  { %v239_v36 = vadd.f32 0.5, %v238_v33 }
 0x129   :  { %v219_v40 = vmul.f32 %v217_v39, %v213_v32 }
 0x12a   :  { %v245_v44 = vmul.f32 %v243_v41, %v239_v36 }
 0x195   :  { %v222_v34 = vpop.permute.xlu0 %221 }
 0x196   :  { %v224_v35 = vmul.f32 %v222_v34, %v213_v32 }
 0x198   :  { %226 = vrot.lane.b32.xlu0 %v224_v35, %s1865_s2 }
 0x199   :  { %v248_v37 = vpop.permute.xlu0 %247 }
 0x19a   :  { %v250_v38 = vmul.f32 %v248_v37, %v239_v36 }
 0x19c   :  { %252 = vrot.lane.b32.xlu1 %v250_v38, %s1865_s2 }
 0x20a   :  { %v227_v42 = vpop.permute.xlu0 %226 }
 0x20b   :  { %v2004_v43 = vadd.f32 %v227_v42, %v219_v40  ;;  %v2076_v40 = vld [vmem:[#allocation6 + $0x8] sm:$0xff]   ;;  %v2079_v42 = vld [vmem:[#allocation9 + $0x10] sm:$0xff]  }
 0x20c   :  { %v480_v41 = vunpack.c.l.bf16 %v2076_v40 }
 0x20d   :  { %1652 = vtanh.f32 %v2004_v43 }
 0x20e   :  { %v253_v45 = vpop.permute.xlu1 %252 }
 0x20f   :  { %v2007_v46 = vadd.f32 %v253_v45, %v245_v44 }
 0x211   :  { %1654 = vtanh.f32 %v2007_v46 }
 0x217   :  { %v1653_v47 = vpop.eup %1652 }
 0x218   :  { %232 = vrot.lane.b32.xlu0 %v1653_v47, %s1860_s27 }
 0x21b   :  { %v1655_v48 = vpop.eup %1654 }
 0x21c   :  { %258 = vrot.lane.b32.xlu1 %v1655_v48, %s1860_s27 }
 0x28a   :  { %v233_v49 = vpop.permute.xlu0 %232 }
 0x28b   :  { %v2012_v50 = vmul.f32 %v233_v49, %v213_v32 }
 0x28d   :  { %v275_v51 = vpack.c.bf16 %v2012_v50, %v2012_v50 }
 0x28e   :  { %v259_v52 = vpop.permute.xlu1 %258 }
 0x28f   :  { %v2016_v53 = vmul.f32 %v259_v52, %v239_v36  ;;  %277 = vrot.lane.b32.xlu0 %v275_v51, %s1865_s2 }
 0x291   :  { %v326_v54 = vpack.c.bf16 %v2016_v53, %v2016_v53 }
 0x293   :  { %328 = vrot.lane.b32.xlu1 %v326_v54, %s1865_s2 }
 0x301   :  { %v278_v55 = vpop.permute.xlu0 %277 }
 0x302   :  { %1520 = vmatmul.mubr.msk.bf16.vlgmr.msra.gmra.mrb[4].mxu0 %vm72_vm0, %v278_v55 }
 0x303   :  { %1532 = vmatpush3.bf16.msra.mxu0 %v1962_v1  ;;  %1535 = vmatprep.mubr.msk.bf16.mxu0 %vm1864_vm1, %v1863_v0 }
 0x304   :  { %1533 = vmatprep.subr.bf16.mxu0 %v1863_v0 }
 0x305   :  { %v329_v56 = vpop.permute.xlu1 %328 }
 0x306   :  { %1528 = vmatmul.mubr.msk.bf16.vlgmr.msra.gmra.mrb[4].mxu1 %vm72_vm0, %v329_v56 }
 0x307   :  { %1540 = vmatpush3.bf16.msra.mxu1 %v1964_v2  ;;  %1534 = vmatpush3.bf16.msra.mxu0 %v1967_v3 }
 0x308   :  { %1541 = vmatprep.subr.bf16.mxu1 %v1863_v0  ;;  %1543 = vmatprep.mubr.msk.bf16.mxu1 %vm1864_vm1, %v1863_v0 }
 0x309   :  { %1547 = vmatprep.subr.bf16.mxu0 %v1863_v0 }
 0x30b   :  { %1542 = vmatpush3.bf16.msra.mxu1 %v1971_v4 }
 0x30c   :  { %1555 = vmatprep.subr.bf16.mxu1 %v1863_v0 }
 0x3d5   :  { %v316_v58 = vpop.f32.mrb[4].mxu0 }
 0x3d6   :  { %v323_v59 = vadd.f32 %v322_v57, %v316_v58  ;;  %v1521_v60 = vpop.f32.mrb[5].mxu0 }
 0x3d7   :  { %v319_v62 = vpop.f32.mrb[6].mxu0 }
 0x3d8   :  { %1656 = vtanh.f32 %v323_v59  ;;  %v1522_v63 = vpop.f32.mrb[7].mxu0  ;;  %v375_v11 = vmul.f32 0.5, %v323_v59 }
 0x3d9   :  { %v367_v5 = vpop.f32.mrb[4].mxu1 }
 0x3da   :  { %v374_v6 = vadd.f32 %v373_v61, %v367_v5  ;;  %v1529_v7 = vpop.f32.mrb[5].mxu1 }
 0x3db   :  { %v370_v8 = vpop.f32.mrb[6].mxu1 }
 0x3dc   :  { %1658 = vtanh.f32 %v374_v6  ;;  %v1530_v9 = vpop.f32.mrb[7].mxu1  ;;  %v397_v14 = vmul.f32 0.5, %v374_v6 }
 0x3dd   :  { %1660 = vtanh.f32 %v375_v11 }
 0x3de   :  { %1662 = vtanh.f32 %v397_v14 }
 0x3e2   :  { %v1657_v10 = vpop.eup %1656 }
 0x3e3   :  { %382 = vrot.lane.b32.xlu0 %v1657_v10, %s1860_s27 }
 0x3e6   :  { %v1659_v13 = vpop.eup %1658 }
 0x3e7   :  { %404 = vrot.lane.b32.xlu1 %v1659_v13, %s1860_s27  ;;  %v1661_v12 = vpop.eup %1660 }
 0x3e8   :  { %v377_v15 = vmul.f32 0.5, %v1661_v12  ;;  %v1663_v16 = vpop.eup %1662 }
 0x3e9   :  { %v399_v18 = vmul.f32 0.5, %v1663_v16 }
 0x3ea   :  { %v378_v17 = vadd.f32 0.5, %v377_v15 }
 0x3eb   :  { %v400_v21 = vadd.f32 0.5, %v399_v18 }
 0x3ec   :  { %v380_v24 = vmul.f32 %v378_v17, %v2004_v43 }
 0x3ed   :  { %v402_v27 = vmul.f32 %v400_v21, %v2007_v46  ;;  %v531_v46 = vunpack.c.h.bf16 %v2079_v42 }
 0x455   :  { %v383_v19 = vpop.permute.xlu0 %382 }
 0x456   :  { %v385_v20 = vmul.f32 %v383_v19, %v378_v17 }
 0x458   :  { %387 = vrot.lane.b32.xlu0 %v385_v20, %s1865_s2 }
 0x459   :  { %v405_v22 = vpop.permute.xlu1 %404 }
 0x45a   :  { %v407_v23 = vmul.f32 %v405_v22, %v400_v21 }
 0x45c   :  { %409 = vrot.lane.b32.xlu1 %v407_v23, %s1865_s2 }
 0x4ca   :  { %v388_v25 = vpop.permute.xlu0 %387 }
 0x4cb   :  { %v2043_v26 = vadd.f32 %v388_v25, %v380_v24 }
 0x4cd   :  { %1664 = vtanh.f32 %v2043_v26 }
 0x4ce   :  { %v410_v28 = vpop.permute.xlu1 %409 }
 0x4cf   :  { %v2047_v29 = vadd.f32 %v410_v28, %v402_v27  ;;  %v638_v27 = vunpack.c.h.bf16 %v2076_v40 }
 0x4d1   :  { %1666 = vtanh.f32 %v2047_v29 }
 0x4d7   :  { %v1665_v30 = vpop.eup %1664 }
 0x4d8   :  { %393 = vrot.lane.b32.xlu0 %v1665_v30, %s1860_s27 }
 0x4db   :  { %v1667_v31 = vpop.eup %1666 }
 0x4dc   :  { %415 = vrot.lane.b32.xlu1 %v1667_v31, %s1860_s27  ;;  %v689_v31 = vunpack.c.l.bf16 %v2079_v42 }
 0x54a   :  { %v394_v32 = vpop.permute.xlu0 %393 }
 0x54b   :  { %v2052_v33 = vmul.f32 %v394_v32, %v378_v17 }
 0x54d   :  { %v433_v34 = vpack.c.bf16 %v2052_v33, %v2052_v33 }
 0x54e   :  { %v416_v35 = vpop.permute.xlu1 %415 }
 0x54f   :  { %v2056_v36 = vmul.f32 %v416_v35, %v400_v21  ;;  %435 = vrot.lane.b32.xlu0 %v433_v34, %s1865_s2 }
 0x551   :  { %v484_v37 = vpack.c.bf16 %v2056_v36, %v2056_v36 }
 0x553   :  { %486 = vrot.lane.b32.xlu1 %v484_v37, %s1865_s2 }
 0x5c1   :  { %v436_v38 = vpop.permute.xlu0 %435 }
 0x5c2   :  { %1536 = vmatmul.mubr.msk.bf16.vlgmr.msra.gmra.mrb[8].mxu0 %vm72_vm0, %v436_v38 }
 0x5c3   :  { %1548 = vmatpush3.bf16.msra.mxu0 %v1962_v1  ;;  %1551 = vmatprep.mubr.msk.bf16.mxu0 %vm1864_vm1, %v1863_v0 }
 0x5c4   :  { %1549 = vmatprep.subr.bf16.mxu0 %v1863_v0 }
 0x5c5   :  { %v487_v39 = vpop.permute.xlu1 %486 }
 0x5c6   :  { %1544 = vmatmul.mubr.msk.bf16.vlgmr.msra.gmra.mrb[8].mxu1 %vm72_vm0, %v487_v39 }
 0x5c7   :  { %1556 = vmatpush3.bf16.msra.mxu1 %v1964_v2  ;;  %1550 = vmatpush3.bf16.msra.mxu0 %v1967_v3 }
 0x5c8   :  { %1557 = vmatprep.subr.bf16.mxu1 %v1863_v0  ;;  %1559 = vmatprep.mubr.msk.bf16.mxu1 %vm1864_vm1, %v1863_v0 }
 0x5c9   :  { %1563 = vmatprep.subr.bf16.mxu0 %v1863_v0 }
 0x5cb   :  { %1558 = vmatpush3.bf16.msra.mxu1 %v1971_v4 }
 0x5cc   :  { %1571 = vmatprep.subr.bf16.mxu1 %v1863_v0 }
 0x695   :  { %v474_v43 = vpop.f32.mrb[8].mxu0 }
 0x696   :  { %v481_v44 = vadd.f32 %v480_v41, %v474_v43  ;;  %v1537_v45 = vpop.f32.mrb[9].mxu0 }
 0x697   :  { %v477_v47 = vpop.f32.mrb[10].mxu0 }
 0x698   :  { %1668 = vtanh.f32 %v481_v44  ;;  %v1538_v48 = vpop.f32.mrb[11].mxu0  ;;  %v533_v58 = vmul.f32 0.5, %v481_v44 }
 0x699   :  { %v525_v49 = vpop.f32.mrb[8].mxu1 }
 0x69a   :  { %v532_v51 = vadd.f32 %v531_v46, %v525_v49  ;;  %v1545_v52 = vpop.f32.mrb[9].mxu1 }
 0x69b   :  { %v528_v54 = vpop.f32.mrb[10].mxu1 }
 0x69c   :  { %1670 = vtanh.f32 %v532_v51  ;;  %v1546_v55 = vpop.f32.mrb[11].mxu1  ;;  %v555_v59 = vmul.f32 0.5, %v532_v51 }
 0x69d   :  { %1672 = vtanh.f32 %v533_v58 }
 0x69e   :  { %1674 = vtanh.f32 %v555_v59 }
 0x6a2   :  { %v1669_v56 = vpop.eup %1668 }
 0x6a3   :  { %540 = vrot.lane.b32.xlu0 %v1669_v56, %s1860_s27 }
 0x6a6   :  { %v1671_v57 = vpop.eup %1670 }
 0x6a7   :  { %562 = vrot.lane.b32.xlu1 %v1671_v57, %s1860_s27  ;;  %v1673_v60 = vpop.eup %1672 }
 0x6a8   :  { %v535_v61 = vmul.f32 0.5, %v1673_v60  ;;  %v1675_v62 = vpop.eup %1674 }
 0x6a9   :  { %v557_v5 = vmul.f32 0.5, %v1675_v62 }
 0x6aa   :  { %v536_v63 = vadd.f32 0.5, %v535_v61 }
 0x6ab   :  { %v558_v8 = vadd.f32 0.5, %v557_v5 }
 0x6ac   :  { %v538_v13 = vmul.f32 %v536_v63, %v2043_v26 }
 0x6ad   :  { %v560_v12 = vmul.f32 %v558_v8, %v2047_v29 }
 0x715   :  { %v541_v6 = vpop.permute.xlu0 %540 }
 0x716   :  { %v543_v7 = vmul.f32 %v541_v6, %v536_v63 }
 0x718   :  { %545 = vrot.lane.b32.xlu0 %v543_v7, %s1865_s2 }
 0x719   :  { %v563_v9 = vpop.permute.xlu1 %562 }
 0x71a   :  { %v565_v10 = vmul.f32 %v563_v9, %v558_v8 }
 0x71c   :  { %567 = vrot.lane.b32.xlu1 %v565_v10, %s1865_s2 }
 0x78a   :  { %v546_v11 = vpop.permute.xlu0 %545 }
 0x78b   :  { %v2087_v14 = vadd.f32 %v546_v11, %v538_v13 }
 0x78d   :  { %1676 = vtanh.f32 %v2087_v14 }
 0x78e   :  { %v568_v15 = vpop.permute.xlu1 %567 }
 0x78f   :  { %v2091_v16 = vadd.f32 %v568_v15, %v560_v12  ;;  %v2160_v12 = vld [vmem:[#allocation6 + $0x10] sm:$0xff]  }
 0x790   :  { %v796_v15 = vunpack.c.l.bf16 %v2160_v12 }
 0x791   :  { %1678 = vtanh.f32 %v2091_v16 }
 0x797   :  { %v1677_v17 = vpop.eup %1676 }
 0x798   :  { %551 = vrot.lane.b32.xlu0 %v1677_v17, %s1860_s27 }
 0x79b   :  { %v1679_v18 = vpop.eup %1678 }
 0x79c   :  { %573 = vrot.lane.b32.xlu1 %v1679_v18, %s1860_s27 }
 0x80a   :  { %v552_v19 = vpop.permute.xlu0 %551 }
 0x80b   :  { %v2096_v20 = vmul.f32 %v552_v19, %v536_v63 }
 0x80d   :  { %v591_v21 = vpack.c.bf16 %v2096_v20, %v2096_v20 }
 0x80e   :  { %v574_v22 = vpop.permute.xlu1 %573 }
 0x80f   :  { %v2100_v23 = vmul.f32 %v574_v22, %v558_v8  ;;  %593 = vrot.lane.b32.xlu0 %v591_v21, %s1865_s2 }
 0x811   :  { %v642_v24 = vpack.c.bf16 %v2100_v23, %v2100_v23 }
 0x813   :  { %644 = vrot.lane.b32.xlu1 %v642_v24, %s1865_s2 }
 0x881   :  { %v594_v25 = vpop.permute.xlu0 %593 }
 0x882   :  { %1552 = vmatmul.mubr.msk.bf16.vlgmr.msra.gmra.mrb[12].mxu0 %vm72_vm0, %v594_v25 }
 0x883   :  { %1564 = vmatpush3.bf16.msra.mxu0 %v1962_v1  ;;  %1567 = vmatprep.mubr.msk.bf16.mxu0 %vm1864_vm1, %v1863_v0 }
 0x884   :  { %1565 = vmatprep.subr.bf16.mxu0 %v1863_v0 }
 0x885   :  { %v645_v26 = vpop.permute.xlu1 %644 }
 0x886   :  { %1560 = vmatmul.mubr.msk.bf16.vlgmr.msra.gmra.mrb[12].mxu1 %vm72_vm0, %v645_v26 }
 0x887   :  { %1572 = vmatpush3.bf16.msra.mxu1 %v1964_v2  ;;  %1566 = vmatpush3.bf16.msra.mxu0 %v1967_v3 }
 0x888   :  { %1573 = vmatprep.subr.bf16.mxu1 %v1863_v0  ;;  %1575 = vmatprep.mubr.msk.bf16.mxu1 %vm1864_vm1, %v1863_v0 }
 0x889   :  { %1579 = vmatprep.subr.bf16.mxu0 %v1863_v0 }
 0x88b   :  { %1574 = vmatpush3.bf16.msra.mxu1 %v1971_v4 }
 0x88c   :  { %1587 = vmatprep.subr.bf16.mxu1 %v1863_v0 }
 0x955   :  { %v632_v28 = vpop.f32.mrb[12].mxu0 }
 0x956   :  { %v639_v29 = vadd.f32 %v638_v27, %v632_v28  ;;  %v1553_v30 = vpop.f32.mrb[13].mxu0 }
 0x957   :  { %v635_v32 = vpop.f32.mrb[14].mxu0 }
 0x958   :  { %1680 = vtanh.f32 %v639_v29  ;;  %v1554_v34 = vpop.f32.mrb[15].mxu0  ;;  %v691_v40 = vmul.f32 0.5, %v639_v29 }
 0x959   :  { %v683_v35 = vpop.f32.mrb[12].mxu1 }
 0x95a   :  { %v690_v37 = vadd.f32 %v689_v31, %v683_v35  ;;  %v1561_v38 = vpop.f32.mrb[13].mxu1 }
 0x95b   :  { %v686_v39 = vpop.f32.mrb[14].mxu1 }
 0x95c   :  { %1682 = vtanh.f32 %v690_v37  ;;  %v1562_v41 = vpop.f32.mrb[15].mxu1  ;;  %v713_v45 = vmul.f32 0.5, %v690_v37 }
 0x95d   :  { %1684 = vtanh.f32 %v691_v40 }
 0x95e   :  { %1686 = vtanh.f32 %v713_v45 }
 0x962   :  { %v1681_v43 = vpop.eup %1680 }
 0x963   :  { %698 = vrot.lane.b32.xlu0 %v1681_v43, %s1860_s27 }
 0x966   :  { %v1683_v44 = vpop.eup %1682 }
 0x967   :  { %720 = vrot.lane.b32.xlu1 %v1683_v44, %s1860_s27  ;;  %v1685_v42 = vpop.eup %1684 }
 0x968   :  { %v693_v46 = vmul.f32 0.5, %v1685_v42  ;;  %v1687_v47 = vpop.eup %1686 }
 0x969   :  { %v715_v49 = vmul.f32 0.5, %v1687_v47 }
 0x96a   :  { %v694_v48 = vadd.f32 0.5, %v693_v46 }
 0x96b   :  { %v716_v54 = vadd.f32 0.5, %v715_v49 }
 0x96c   :  { %v696_v57 = vmul.f32 %v694_v48, %v2087_v14 }
 0x96d   :  { %v718_v60 = vmul.f32 %v716_v54, %v2091_v16  ;;  %v2163_v16 = vld [vmem:[#allocation9 + $0x8] sm:$0xff]  }
 0x96e   :  { %v847_v21 = vunpack.c.h.bf16 %v2163_v16 }
 0x9d5   :  { %v699_v51 = vpop.permute.xlu0 %698 }
 0x9d6   :  { %v701_v52 = vmul.f32 %v699_v51, %v694_v48 }
 0x9d8   :  { %703 = vrot.lane.b32.xlu0 %v701_v52, %s1865_s2 }
 0x9d9   :  { %v721_v55 = vpop.permute.xlu1 %720 }
 0x9da   :  { %v723_v56 = vmul.f32 %v721_v55, %v716_v54 }
 0x9dc   :  { %725 = vrot.lane.b32.xlu1 %v723_v56, %s1865_s2 }
 0xa4a   :  { %v704_v58 = vpop.permute.xlu0 %703 }
 0xa4b   :  { %v2127_v59 = vadd.f32 %v704_v58, %v696_v57 }
 0xa4d   :  { %1688 = vtanh.f32 %v2127_v59 }
 0xa4e   :  { %v726_v61 = vpop.permute.xlu1 %725 }
 0xa4f   :  { %v2131_v62 = vadd.f32 %v726_v61, %v718_v60 }
 0xa51   :  { %1690 = vtanh.f32 %v2131_v62 }
 0xa57   :  { %v1689_v63 = vpop.eup %1688 }
 0xa58   :  { %709 = vrot.lane.b32.xlu0 %v1689_v63, %s1860_s27 }
 0xa5b   :  { %v1691_v5 = vpop.eup %1690 }
 0xa5c   :  { %731 = vrot.lane.b32.xlu1 %v1691_v5, %s1860_s27  ;;  %v954_v5 = vunpack.c.h.bf16 %v2160_v12 }
 0xaca   :  { %v710_v6 = vpop.permute.xlu0 %709 }
 0xacb   :  { %v2136_v7 = vmul.f32 %v710_v6, %v694_v48 }
 0xacd   :  { %v749_v8 = vpack.c.bf16 %v2136_v7, %v2136_v7 }
 0xace   :  { %v732_v9 = vpop.permute.xlu1 %731 }
 0xacf   :  { %v2140_v10 = vmul.f32 %v732_v9, %v716_v54  ;;  %751 = vrot.lane.b32.xlu0 %v749_v8, %s1865_s2 }
 0xad1   :  { %v800_v13 = vpack.c.bf16 %v2140_v10, %v2140_v10 }
 0xad3   :  { %802 = vrot.lane.b32.xlu1 %v800_v13, %s1865_s2  ;;  %v1005_v13 = vunpack.c.l.bf16 %v2163_v16 }
 0xb41   :  { %v752_v11 = vpop.permute.xlu0 %751 }
 0xb42   :  { %1568 = vmatmul.mubr.msk.bf16.vlgmr.msra.gmra.mrb[16].mxu0 %vm72_vm0, %v752_v11 }
 0xb43   :  { %1580 = vmatpush3.bf16.msra.mxu0 %v1962_v1  ;;  %1583 = vmatprep.mubr.msk.bf16.mxu0 %vm1864_vm1, %v1863_v0 }
 0xb44   :  { %1581 = vmatprep.subr.bf16.mxu0 %v1863_v0 }
 0xb45   :  { %v803_v14 = vpop.permute.xlu1 %802 }
 0xb46   :  { %1576 = vmatmul.mubr.msk.bf16.vlgmr.msra.gmra.mrb[16].mxu1 %vm72_vm0, %v803_v14 }
 0xb47   :  { %1588 = vmatpush3.bf16.msra.mxu1 %v1964_v2  ;;  %1582 = vmatpush3.bf16.msra.mxu0 %v1967_v3 }
 0xb48   :  { %1589 = vmatprep.subr.bf16.mxu1 %v1863_v0  ;;  %1591 = vmatprep.mubr.msk.bf16.mxu1 %vm1864_vm1, %v1863_v0 }
 0xb49   :  { %1595 = vmatprep.subr.bf16.mxu0 %v1863_v0 }
 0xb4b   :  { %1590 = vmatpush3.bf16.msra.mxu1 %v1971_v4 }
 0xb4c   :  { %1603 = vmatprep.subr.bf16.mxu1 %v1863_v0 }
 0xc15   :  { %v790_v17 = vpop.f32.mrb[16].mxu0 }
 0xc16   :  { %v797_v18 = vadd.f32 %v796_v15, %v790_v17  ;;  %v1569_v19 = vpop.f32.mrb[17].mxu0 }
 0xc17   :  { %v793_v22 = vpop.f32.mrb[18].mxu0 }
 0xc18   :  { %1692 = vtanh.f32 %v797_v18  ;;  %v1570_v24 = vpop.f32.mrb[19].mxu0  ;;  %v849_v32 = vmul.f32 0.5, %v797_v18 }
 0xc19   :  { %v841_v25 = vpop.f32.mrb[16].mxu1 }
 0xc1a   :  { %v848_v26 = vadd.f32 %v847_v21, %v841_v25  ;;  %v1577_v27 = vpop.f32.mrb[17].mxu1 }
 0xc1b   :  { %v844_v28 = vpop.f32.mrb[18].mxu1 }
 0xc1c   :  { %1694 = vtanh.f32 %v848_v26  ;;  %v1578_v29 = vpop.f32.mrb[19].mxu1  ;;  %v871_v34 = vmul.f32 0.5, %v848_v26 }
 0xc1d   :  { %1696 = vtanh.f32 %v849_v32 }
 0xc1e   :  { %1698 = vtanh.f32 %v871_v34 }
 0xc22   :  { %v1693_v30 = vpop.eup %1692 }
 0xc23   :  { %856 = vrot.lane.b32.xlu0 %v1693_v30, %s1860_s27 }
 0xc26   :  { %v1695_v31 = vpop.eup %1694 }
 0xc27   :  { %878 = vrot.lane.b32.xlu1 %v1695_v31, %s1860_s27  ;;  %v1697_v35 = vpop.eup %1696 }
 0xc28   :  { %v851_v37 = vmul.f32 0.5, %v1697_v35  ;;  %v1699_v38 = vpop.eup %1698 }
 0xc29   :  { %v873_v41 = vmul.f32 0.5, %v1699_v38 }
 0xc2a   :  { %v852_v39 = vadd.f32 0.5, %v851_v37 }
 0xc2b   :  { %v874_v40 = vadd.f32 0.5, %v873_v41 }
 0xc2c   :  { %v854_v46 = vmul.f32 %v852_v39, %v2127_v59 }
 0xc2d   :  { %v876_v49 = vmul.f32 %v874_v40, %v2131_v62 }
 0xc95   :  { %v857_v43 = vpop.permute.xlu0 %856 }
 0xc96   :  { %v859_v44 = vmul.f32 %v857_v43, %v852_v39 }
 0xc98   :  { %861 = vrot.lane.b32.xlu0 %v859_v44, %s1865_s2 }
 0xc99   :  { %v879_v45 = vpop.permute.xlu1 %878 }
 0xc9a   :  { %v881_v42 = vmul.f32 %v879_v45, %v874_v40 }
 0xc9c   :  { %883 = vrot.lane.b32.xlu1 %v881_v42, %s1865_s2 }
 0xd0a   :  { %v862_v47 = vpop.permute.xlu0 %861 }
 0xd0b   :  { %v2171_v48 = vadd.f32 %v862_v47, %v854_v46 }
 0xd0d   :  { %1700 = vtanh.f32 %v2171_v48 }
 0xd0e   :  { %v884_v51 = vpop.permute.xlu1 %883 }
 0xd0f   :  { %v2175_v52 = vadd.f32 %v884_v51, %v876_v49 }
 0xd11   :  { %1702 = vtanh.f32 %v2175_v52 }
 0xd17   :  { %v1701_v54 = vpop.eup %1700 }
 0xd18   :  { %867 = vrot.lane.b32.xlu0 %v1701_v54, %s1860_s27 }
 0xd1b   :  { %v1703_v55 = vpop.eup %1702 }
 0xd1c   :  { %889 = vrot.lane.b32.xlu1 %v1703_v55, %s1860_s27 }
 0xd8a   :  { %v868_v56 = vpop.permute.xlu0 %867 }
 0xd8b   :  { %v2180_v57 = vmul.f32 %v868_v56, %v852_v39  ;;  %v2245_v56 = vld [vmem:[#allocation9] sm:$0xff]  }
 0xd8d   :  { %v907_v58 = vpack.c.bf16 %v2180_v57, %v2180_v57 }
 0xd8e   :  { %v890_v59 = vpop.permute.xlu1 %889 }
 0xd8f   :  { %v2184_v60 = vmul.f32 %v890_v59, %v874_v40  ;;  %909 = vrot.lane.b32.xlu0 %v907_v58, %s1865_s2 }
 0xd91   :  { %v958_v61 = vpack.c.bf16 %v2184_v60, %v2184_v60 }
 0xd93   :  { %960 = vrot.lane.b32.xlu1 %v958_v61, %s1865_s2 }
 0xe01   :  { %v910_v62 = vpop.permute.xlu0 %909 }
 0xe02   :  { %1584 = vmatmul.mubr.msk.bf16.vlgmr.msra.gmra.mrb[20].mxu0 %vm72_vm0, %v910_v62 }
 0xe03   :  { %1596 = vmatpush3.bf16.msra.mxu0 %v1962_v1  ;;  %1599 = vmatprep.mubr.msk.bf16.mxu0 %vm1864_vm1, %v1863_v0 }
 0xe04   :  { %1597 = vmatprep.subr.bf16.mxu0 %v1863_v0 }
 0xe05   :  { %v961_v63 = vpop.permute.xlu1 %960 }
 0xe06   :  { %1592 = vmatmul.mubr.msk.bf16.vlgmr.msra.gmra.mrb[20].mxu1 %vm72_vm0, %v961_v63 }
 0xe07   :  { %1604 = vmatpush3.bf16.msra.mxu1 %v1964_v2  ;;  %1598 = vmatpush3.bf16.msra.mxu0 %v1967_v3 }
 0xe08   :  { %1605 = vmatprep.subr.bf16.mxu1 %v1863_v0  ;;  %1607 = vmatprep.mubr.msk.bf16.mxu1 %vm1864_vm1, %v1863_v0 }
 0xe09   :  { %1611 = vmatprep.subr.bf16.mxu0 %v1863_v0 }
 0xe0b   :  { %1606 = vmatpush3.bf16.msra.mxu1 %v1971_v4 }
 0xe0c   :  { %1619 = vmatprep.subr.bf16.mxu1 %v1863_v0 }
 0xed5   :  { %v948_v6 = vpop.f32.mrb[20].mxu0 }
 0xed6   :  { %v955_v8 = vadd.f32 %v954_v5, %v948_v6  ;;  %v1585_v9 = vpop.f32.mrb[21].mxu0 }
 0xed7   :  { %v951_v11 = vpop.f32.mrb[22].mxu0 }
 0xed8   :  { %1704 = vtanh.f32 %v955_v8  ;;  %v1586_v14 = vpop.f32.mrb[23].mxu0  ;;  %v1007_v12 = vmul.f32 0.5, %v955_v8 }
 0xed9   :  { %v999_v15 = vpop.f32.mrb[20].mxu1 }
 0xeda   :  { %v1006_v17 = vadd.f32 %v1005_v13, %v999_v15  ;;  %v1593_v18 = vpop.f32.mrb[21].mxu1 }
 0xedb   :  { %v1002_v19 = vpop.f32.mrb[22].mxu1 }
 0xedc   :  { %1706 = vtanh.f32 %v1006_v17  ;;  %v1594_v21 = vpop.f32.mrb[23].mxu1  ;;  %v1029_v25 = vmul.f32 0.5, %v1006_v17 }
 0xedd   :  { %1708 = vtanh.f32 %v1007_v12 }
 0xede   :  { %1710 = vtanh.f32 %v1029_v25 }
 0xee2   :  { %v1705_v22 = vpop.eup %1704 }
 0xee3   :  { %1014 = vrot.lane.b32.xlu0 %v1705_v22, %s1860_s27 }
 0xee6   :  { %v1707_v24 = vpop.eup %1706 }
 0xee7   :  { %1036 = vrot.lane.b32.xlu1 %v1707_v24, %s1860_s27  ;;  %v1709_v16 = vpop.eup %1708 }
 0xee8   :  { %v1009_v26 = vmul.f32 0.5, %v1709_v16  ;;  %v1711_v27 = vpop.eup %1710 }
 0xee9   :  { %v1031_v29 = vmul.f32 0.5, %v1711_v27 }
 0xeea   :  { %v1010_v28 = vadd.f32 0.5, %v1009_v26 }
 0xeeb   :  { %v1032_v32 = vadd.f32 0.5, %v1031_v29 }
 0xeec   :  { %v1012_v37 = vmul.f32 %v1010_v28, %v2171_v48 }
 0xeed   :  { %v1034_v41 = vmul.f32 %v1032_v32, %v2175_v52 }
 0xf55   :  { %v1015_v30 = vpop.permute.xlu0 %1014 }
 0xf56   :  { %v1017_v31 = vmul.f32 %v1015_v30, %v1010_v28 }
 0xf58   :  { %1019 = vrot.lane.b32.xlu0 %v1017_v31, %s1865_s2 }
 0xf59   :  { %v1037_v34 = vpop.permute.xlu1 %1036 }
 0xf5a   :  { %v1039_v35 = vmul.f32 %v1037_v34, %v1032_v32 }
 0xf5c   :  { %1041 = vrot.lane.b32.xlu1 %v1039_v35, %s1865_s2 }
 0xfca   :  { %v1020_v38 = vpop.permute.xlu0 %1019 }
 0xfcb   :  { %v2211_v39 = vadd.f32 %v1020_v38, %v1012_v37 }
 0xfcd   :  { %1712 = vtanh.f32 %v2211_v39 }
 0xfce   :  { %v1042_v43 = vpop.permute.xlu1 %1041 }
 0xfcf   :  { %v2215_v44 = vadd.f32 %v1042_v43, %v1034_v41 }
 0xfd1   :  { %1714 = vtanh.f32 %v2215_v44 }
 0xfd7   :  { %v1713_v40 = vpop.eup %1712 }
 0xfd8   :  { %1025 = vrot.lane.b32.xlu0 %v1713_v40, %s1860_s27 }
 0xfdb   :  { %v1715_v45 = vpop.eup %1714 }
 0xfdc   :  { %1047 = vrot.lane.b32.xlu1 %v1715_v45, %s1860_s27 }
0x104a   :  { %v1026_v42 = vpop.permute.xlu0 %1025 }
0x104b   :  { %v2220_v46 = vmul.f32 %v1026_v42, %v1010_v28 }
0x104d   :  { %v1065_v47 = vpack.c.bf16 %v2220_v46, %v2220_v46 }
0x104e   :  { %v1048_v48 = vpop.permute.xlu1 %1047 }
0x104f   :  { %v2224_v49 = vmul.f32 %v1048_v48, %v1032_v32  ;;  %1067 = vrot.lane.b32.xlu0 %v1065_v47, %s1865_s2  ;;  %v1320_v48 = vunpack.c.l.bf16 %v2245_v56 }
0x1051   :  { %v1116_v51 = vpack.c.bf16 %v2224_v49, %v2224_v49 }
0x1053   :  { %1118 = vrot.lane.b32.xlu1 %v1116_v51, %s1865_s2 }
0x10c1   :  { %v1068_v52 = vpop.permute.xlu0 %1067 }
0x10c2   :  { %1600 = vmatmul.mubr.msk.bf16.vlgmr.msra.gmra.mrb[24].mxu0 %vm72_vm0, %v1068_v52 }
0x10c3   :  { %1612 = vmatpush3.bf16.msra.mxu0 %v1962_v1  ;;  %1615 = vmatprep.mubr.msk.bf16.mxu0 %vm1864_vm1, %v1863_v0  ;;  %v2242_v1 = vld [vmem:[#allocation6 + $0x18] sm:$0xff]  }
0x10c4   :  { %1613 = vmatprep.subr.bf16.mxu0 %v1863_v0  ;;  %v1112_v55 = vunpack.c.l.bf16 %v2242_v1  ;;  %v1270_v40 = vunpack.c.h.bf16 %v2242_v1 }
0x10c5   :  { %v1119_v54 = vpop.permute.xlu1 %1118 }
0x10c6   :  { %1608 = vmatmul.mubr.msk.bf16.vlgmr.msra.gmra.mrb[24].mxu1 %vm72_vm0, %v1119_v54 }
0x10c7   :  { %1620 = vmatpush3.bf16.msra.mxu1 %v1964_v2  ;;  %1614 = vmatpush3.bf16.msra.mxu0 %v1967_v3  ;;  %v1163_v2 = vunpack.c.h.bf16 %v2245_v56 }
0x10c8   :  { %1621 = vmatprep.subr.bf16.mxu1 %v1863_v0  ;;  %1623 = vmatprep.mubr.msk.bf16.mxu1 %vm1864_vm1, %v1863_v0 }
0x10cb   :  { %1622 = vmatpush3.bf16.msra.mxu1 %v1971_v4 }
0x1195   :  { %v1106_v58 = vpop.f32.mrb[24].mxu0 }
0x1196   :  { %v1113_v59 = vadd.f32 %v1112_v55, %v1106_v58  ;;  %v1601_v61 = vpop.f32.mrb[25].mxu0 }
0x1197   :  { %v1109_v62 = vpop.f32.mrb[26].mxu0 }
0x1198   :  { %1716 = vtanh.f32 %v1113_v59  ;;  %v1602_v3 = vpop.f32.mrb[27].mxu0  ;;  %v1165_v13 = vmul.f32 0.5, %v1113_v59 }
0x1199   :  { %v1157_v63 = vpop.f32.mrb[24].mxu1 }
0x119a   :  { %v1164_v5 = vadd.f32 %v1163_v2, %v1157_v63  ;;  %v1609_v6 = vpop.f32.mrb[25].mxu1 }
0x119b   :  { %v1160_v0 = vpop.f32.mrb[26].mxu1 }
0x119c   :  { %1718 = vtanh.f32 %v1164_v5  ;;  %v1610_v4 = vpop.f32.mrb[27].mxu1  ;;  %v1187_v11 = vmul.f32 0.5, %v1164_v5 }
0x119d   :  { %1720 = vtanh.f32 %v1165_v13 }
0x119e   :  { %1722 = vtanh.f32 %v1187_v11 }
0x11a2   :  { %v1717_v8 = vpop.eup %1716 }
0x11a3   :  { %1172 = vrot.lane.b32.xlu0 %v1717_v8, %s1860_s27 }
0x11a6   :  { %v1719_v9 = vpop.eup %1718 }
0x11a7   :  { %1194 = vrot.lane.b32.xlu1 %v1719_v9, %s1860_s27  ;;  %v1721_v14 = vpop.eup %1720 }
0x11a8   :  { %v1167_v15 = vmul.f32 0.5, %v1721_v14  ;;  %v1723_v17 = vpop.eup %1722 }
0x11a9   :  { %v1189_v19 = vmul.f32 0.5, %v1723_v17 }
0x11aa   :  { %v1168_v18 = vadd.f32 0.5, %v1167_v15 }
0x11ab   :  { %v1190_v24 = vadd.f32 0.5, %v1189_v19 }
0x11ac   :  { %v1170_v16 = vmul.f32 %v1168_v18, %v2211_v39 }
0x11ad   :  { %v1192_v28 = vmul.f32 %v1190_v24, %v2215_v44 }
0x1215   :  { %v1173_v21 = vpop.permute.xlu0 %1172 }
0x1216   :  { %v1175_v22 = vmul.f32 %v1173_v21, %v1168_v18 }
0x1218   :  { %1177 = vrot.lane.b32.xlu0 %v1175_v22, %s1865_s2 }
0x1219   :  { %v1195_v12 = vpop.permute.xlu1 %1194 }
0x121a   :  { %v1197_v25 = vmul.f32 %v1195_v12, %v1190_v24 }
0x121c   :  { %1199 = vrot.lane.b32.xlu1 %v1197_v25, %s1865_s2 }
0x128a   :  { %v1178_v26 = vpop.permute.xlu0 %1177 }
0x128b   :  { %v1180_v27 = vadd.f32 %v1178_v26, %v1170_v16 }
0x128d   :  { %1724 = vtanh.f32 %v1180_v27 }
0x128e   :  { %v1200_v29 = vpop.permute.xlu1 %1199 }
0x128f   :  { %v1202_v30 = vadd.f32 %v1200_v29, %v1192_v28 }
0x1291   :  { %1726 = vtanh.f32 %v1202_v30 }
0x1297   :  { %v1725_v31 = vpop.eup %1724 }
0x1298   :  { %1183 = vrot.lane.b32.xlu0 %v1725_v31, %s1860_s27 }
0x129b   :  { %v1727_v32 = vpop.eup %1726 }
0x129c   :  { %1205 = vrot.lane.b32.xlu1 %v1727_v32, %s1860_s27 }
0x130a   :  { %v1184_v34 = vpop.permute.xlu0 %1183 }
0x130b   :  { %v2256_v35 = vmul.f32 %v1184_v34, %v1168_v18 }
0x130d   :  { %v1223_v37 = vpack.c.bf16 %v2256_v35, %v2256_v35 }
0x130e   :  { %v1206_v38 = vpop.permute.xlu1 %1205 }
0x130f   :  { %v2260_v39 = vmul.f32 %v1206_v38, %v1190_v24  ;;  %1225 = vrot.lane.b32.xlu0 %v1223_v37, %s1865_s2 }
0x1311   :  { %v1273_v41 = vpack.c.bf16 %v2260_v39, %v2260_v39 }
0x1313   :  { %1275 = vrot.lane.b32.xlu1 %v1273_v41, %s1865_s2 }
0x1381   :  { %v1226_v43 = vpop.permute.xlu0 %1225 }
0x1382   :  { %1616 = vmatmul.mubr.msk.bf16.vlgmr.msra.gmra.mrb[28].mxu0 %vm72_vm0, %v1226_v43 }
0x1385   :  { %v1276_v44 = vpop.permute.xlu1 %1275 }
0x1386   :  { %1624 = vmatmul.mubr.msk.bf16.vlgmr.msra.gmra.mrb[28].mxu1 %vm72_vm0, %v1276_v44 }
0x1455   :  { %v1264_v45 = vpop.f32.mrb[28].mxu0 }
0x1456   :  { %v1271_v42 = vadd.f32 %v1270_v40, %v1264_v45  ;;  %v1617_v47 = vpop.f32.mrb[29].mxu0 }
0x1457   :  { %v1267_v51 = vpop.f32.mrb[30].mxu0 }
0x1458   :  { %1728 = vtanh.f32 %v1271_v42  ;;  %v1618_v52 = vpop.f32.mrb[31].mxu0  ;;  %v1322_v1 = vmul.f32 0.5, %v1271_v42 }
0x1459   :  { %v1314_v54 = vpop.f32.mrb[28].mxu1 }
0x145a   :  { %v1321_v55 = vadd.f32 %v1320_v48, %v1314_v54  ;;  %v1625_v58 = vpop.f32.mrb[29].mxu1 }
0x145b   :  { %v1317_v59 = vpop.f32.mrb[30].mxu1 }
0x145c   :  { %1730 = vtanh.f32 %v1321_v55  ;;  %v1626_v61 = vpop.f32.mrb[31].mxu1  ;;  %v1344_v3 = vmul.f32 0.5, %v1321_v55 }
0x145d   :  { %1732 = vtanh.f32 %v1322_v1 }
0x145e   :  { %1734 = vtanh.f32 %v1344_v3 }
0x1462   :  { %v1729_v2 = vpop.eup %1728 }
0x1463   :  { %1329 = vrot.lane.b32.xlu0 %v1729_v2, %s1860_s27 }
0x1466   :  { %v1731_v62 = vpop.eup %1730 }
0x1467   :  { %1351 = vrot.lane.b32.xlu1 %v1731_v62, %s1860_s27  ;;  %v1733_v56 = vpop.eup %1732 }
0x1468   :  { %v1324_v63 = vmul.f32 0.5, %v1733_v56  ;;  %v1735_v5 = vpop.eup %1734 }
0x1469   :  { %v1346_v0 = vmul.f32 0.5, %v1735_v5 }
0x146a   :  { %v1325_v6 = vadd.f32 0.5, %v1324_v63 }
0x146b   :  { %v1347_v9 = vadd.f32 0.5, %v1346_v0 }
0x146c   :  { %v1327_v14 = vmul.f32 %v1325_v6, %v1180_v27 }
0x146d   :  { %v1349_v18 = vmul.f32 %v1347_v9, %v1202_v30 }
0x14d5   :  { %v1330_v4 = vpop.permute.xlu0 %1329 }
0x14d6   :  { %v1332_v8 = vmul.f32 %v1330_v4, %v1325_v6 }
0x14d8   :  { %1334 = vrot.lane.b32.xlu0 %v1332_v8, %s1865_s2 }
0x14d9   :  { %v1352_v13 = vpop.permute.xlu1 %1351 }
0x14da   :  { %v1354_v11 = vmul.f32 %v1352_v13, %v1347_v9 }
0x14dc   :  { %1356 = vrot.lane.b32.xlu1 %v1354_v11, %s1865_s2 }
0x154a   :  { %v1335_v15 = vpop.permute.xlu0 %1334 }
0x154b   :  { %v1337_v17 = vadd.f32 %v1335_v15, %v1327_v14 }
0x154d   :  { %1736 = vtanh.f32 %v1337_v17 }
0x154e   :  { %v1357_v19 = vpop.permute.xlu1 %1356 }
0x154f   :  { %v1359_v21 = vadd.f32 %v1357_v19, %v1349_v18 }
0x1551   :  { %1738 = vtanh.f32 %v1359_v21 }
0x1557   :  { %v1737_v22 = vpop.eup %1736 }
0x1558   :  { %1340 = vrot.lane.b32.xlu0 %v1737_v22, %s1860_s27 }
0x155b   :  { %v1739_v24 = vpop.eup %1738 }
0x155c   :  { %1362 = vrot.lane.b32.xlu1 %v1739_v24, %s1860_s27  ;;  %263 = vrot.lane.b32.xlu0 %v2012_v50, %s1865_s2  ;;  %s1394_s27 = sshll.u32 %s1867_s26, 4  ;;  %s1395_s27 = int_to_ptr.vmem [resolvable:$true] %s1394_s27 }
0x155d   :  { %s1806_s30 = scalar_lea.vmem %s1395_s27, 1024  ;;  %p1811_p11 = scmp.lt.s32.totalorder %s1395_s27, %s1395_s27 }
0x155e   :  { %p1807_p10 = scmp.ne.s32.totalorder %s1395_s27, %s1806_s30  ;;  %p1812_p12 = scmp.lt.s32.totalorder %s1806_s30, %s1806_s30 }
0x1560   :  { %268 = vrot.lane.b32.xlu1 %v2016_v53, %s1865_s2  ;;  %420 = vrot.lane.b32.xlu0 %v2052_v33, %s1865_s2  ;;  %p1813_p13 = por %p1812_p12, %p1811_p11 }
0x1562   :  { %p1814_p0 = pnand %p1813_p13, %p1807_p10 }
0x1564   :  { %426 = vrot.lane.b32.xlu1 %v2056_v36, %s1865_s2  ;;  %578 = vrot.lane.b32.xlu0 %v2096_v20, %s1865_s2 }
0x1568   :  { %584 = vrot.lane.b32.xlu1 %v2100_v23, %s1865_s2  ;;  %736 = vrot.lane.b32.xlu0 %v2136_v7, %s1865_s2 }
0x156c   :  { %742 = vrot.lane.b32.xlu1 %v2140_v10, %s1865_s2  ;;  %894 = vrot.lane.b32.xlu0 %v2180_v57, %s1865_s2 }
0x1570   :  { %900 = vrot.lane.b32.xlu1 %v2184_v60, %s1865_s2  ;;  %1052 = vrot.lane.b32.xlu0 %v2220_v46, %s1865_s2 }
0x1574   :  { %1058 = vrot.lane.b32.xlu1 %v2224_v49, %s1865_s2  ;;  %1210 = vrot.lane.b32.xlu0 %v2256_v35, %s1865_s2 }
0x1578   :  { %1216 = vrot.lane.b32.xlu1 %v2260_v39, %s1865_s2 }
0x15ca   :  { %v1341_v50 = vpop.permute.xlu0 %1340 }
0x15cb   :  { %v1343_v53 = vmul.f32 %v1341_v50, %v1325_v6 }
0x15cd   :  { %1367 = vrot.lane.b32.xlu0 %v1343_v53, %s1865_s2 }
0x15ce   :  { %v1363_v33 = vpop.permute.xlu1 %1362  ;;  %v264_v36 = vpop.permute.xlu0 %263 }
0x15cf   :  { %v1365_v20 = vmul.f32 %v1363_v33, %v1347_v9  ;;  %266 = vst.msk [vmem:[#allocation12] sm:$0xff] %vm72_vm0, %v264_v36 }
0x15d1   :  { %1373 = vrot.lane.b32.xlu1 %v1365_v20, %s1865_s2  ;;  %1379 = vrot.lane.b32.xlu0 %v1337_v17, %s1866_s25 }
0x15d2   :  { %v269_v23 = vpop.permute.xlu1 %268  ;;  %v421_v7 = vpop.permute.xlu0 %420 }
0x15d3   :  { %272 = vst.msk [vmem:[#allocation13 + $0x38] sm:$0xff] %vm72_vm0, %v269_v23  ;;  %424 = vst.msk [vmem:[#allocation12 + $0x8] sm:$0xff] %vm72_vm0, %v421_v7 }
0x15d5   :  { %1385 = vrot.lane.b32.xlu1 %v1359_v21, %s1866_s25 }
0x15d6   :  { %v427_v10 = vpop.permute.xlu1 %426  ;;  %v579_v57 = vpop.permute.xlu0 %578 }
0x15d7   :  { %430 = vst.msk [vmem:[#allocation13 + $0x30] sm:$0xff] %vm72_vm0, %v427_v10  ;;  %582 = vst.msk [vmem:[#allocation12 + $0x10] sm:$0xff] %vm72_vm0, %v579_v57 }
0x15da   :  { %v585_v60 = vpop.permute.xlu1 %584  ;;  %v737_v46 = vpop.permute.xlu0 %736 }
0x15db   :  { %588 = vst.msk [vmem:[#allocation13 + $0x28] sm:$0xff] %vm72_vm0, %v585_v60  ;;  %740 = vst.msk [vmem:[#allocation12 + $0x18] sm:$0xff] %vm72_vm0, %v737_v46 }
0x15de   :  { %v743_v49 = vpop.permute.xlu1 %742  ;;  %v895_v12 = vpop.permute.xlu0 %894 }
0x15df   :  { %746 = vst.msk [vmem:[#allocation13 + $0x20] sm:$0xff] %vm72_vm0, %v743_v49  ;;  %898 = vst.msk [vmem:[#allocation12 + $0x20] sm:$0xff] %vm72_vm0, %v895_v12 }
0x15e2   :  { %v901_v25 = vpop.permute.xlu1 %900  ;;  %v1053_v16 = vpop.permute.xlu0 %1052 }
0x15e3   :  { %904 = vst.msk [vmem:[#allocation13 + $0x18] sm:$0xff] %vm72_vm0, %v901_v25  ;;  %1056 = vst.msk [vmem:[#allocation12 + $0x28] sm:$0xff] %vm72_vm0, %v1053_v16 }
0x15e6   :  { %v1059_v26 = vpop.permute.xlu1 %1058  ;;  %v1211_v27 = vpop.permute.xlu0 %1210 }
0x15e7   :  { %1062 = vst.msk [vmem:[#allocation13 + $0x10] sm:$0xff] %vm72_vm0, %v1059_v26  ;;  %1214 = vst.msk [vmem:[#allocation12 + $0x30] sm:$0xff] %vm72_vm0, %v1211_v27 }
0x15ea   :  { %v1217_v28 = vpop.permute.xlu1 %1216 }
0x15eb   :  { %1220 = vst.msk [vmem:[#allocation13 + $0x8] sm:$0xff] %vm72_vm0, %v1217_v28 }
0x163f   :  { %v1368_v29 = vpop.permute.xlu0 %1367 }
0x1640   :  { %1371 = vst.msk [vmem:[#allocation12 + $0x38] sm:$0xff] %vm72_vm0, %v1368_v29  ;;  %1377 = vst.msk [vmem:[#allocation2] sm:$0xff] %vm72_vm0, %v1368_v29 }
0x1641   :  { %1817 = shalt.err (!%p1814_p0)
}
0x1642   :  { %s1818_s7 = scalar_lea.hbm %s2353_s3, 1024 }
0x1643   :  { %p1819_p1 = scmp.ne.s32.totalorder %s2353_s3, %s1818_s7  ;;  %p1822_p2 = scmp.lt.u32.totalorder %s1818_s7, %s2353_s3 }
0x1645   :  { %p1824_p3 = pnand %p1822_p2, %p1819_p1 }
0x1647   :  { %1827 = shalt.err (!%p1824_p3)
}
0x1648   :  { %s1869_s12 = smov 128   ;;  %s1870_s1 = smov 8   ;;  %v1374_v30 = vpop.permute.xlu1 %1373  ;;  %v1380_v31 = vpop.permute.xlu0 %1379 }
0x1649   :  { %1400 = dma.vmem_to_hbm [thread:$0]  %s1395_s27, 1024, %s2353_s3, [#allocation8], %s1869_s12, %s1869_s12, %s1870_s1   ;;  %1376 = vst.msk [vmem:[#allocation13] sm:$0xff] %vm72_vm0, %v1374_v30  ;;  %1383 = vst.msk [vmem:[#allocation4] sm:$0xff] %vm72_vm0, %v1374_v30 }
0x164a   :  { %1382 = vst.msk [vmem:[#allocation3] sm:$0xff] %vm72_vm0, %v1380_v31  ;;  %s1828_s15 = scalar_lea.vmem %s1411_s29, 1024  ;;  %p1833_p5 = scmp.lt.s32.totalorder %s1411_s29, %s1411_s29 }
0x164b   :  { %p1829_p4 = scmp.ne.s32.totalorder %s1411_s29, %s1828_s15  ;;  %p1834_p6 = scmp.lt.s32.totalorder %s1828_s15, %s1828_s15 }
0x164d   :  { %p1835_p7 = por %p1834_p6, %p1833_p5 }
0x164f   :  { %p1836_p8 = pnand %p1835_p7, %p1829_p4 }
0x1651   :  { %1839 = shalt.err (!%p1836_p8)
}
0x1652   :  { %s1840_s3 = scalar_lea.hbm %s2354_s4, 1024 }
0x1653   :  { %p1841_p9 = scmp.ne.s32.totalorder %s2354_s4, %s1840_s3  ;;  %p1844_p10 = scmp.lt.u32.totalorder %s1840_s3, %s2354_s4 }
0x1655   :  { %p1846_p11 = pnand %p1844_p10, %p1841_p9 }
0x1657   :  { %1849 = shalt.err (!%p1846_p11)
}
0x1658   :  { %1416 = dma.vmem_to_hbm [thread:$0]  %s1411_s29, 1024, %s2354_s4, [#allocation14], %s1869_s12, %s1869_s12, %s1870_s1   ;;  %v1386_v32 = vpop.permute.xlu1 %1385 }
0x1659   :  { %1388 = vst.msk [vmem:[#allocation5] sm:$0xff] %vm72_vm0, %v1386_v32 }
0x165a   :  { %1854 = dma.done.wait [#allocation8], 1024  }
0x165b   :  { %1855 = vsyncadd [#allocation8], 4294966272 }
0x165c   :  { %1856 = dma.done.wait [#allocation14], 1024  }
0x165d   :  { %1857 = vsyncadd [#allocation14], 4294966272 }
0x165e   :  { %1423 = vsyncpa [#allocation7], 1 }
0x165f   :  { %1424 = vsyncpa [#allocation10], 1 }
0x1660   :  { %1425 = vsyncpa [#allocation8], 1 }
0x1661   :  { %1426 = vsyncpa [#allocation14], 1 }

</bundles_post_ra>
